<compile_context>
chip_gen: v7x
topology: tpu7x:2x2x1
jax: 0.10.0
libtpu: 0.0.40
codegen_flags: <defaults>
</compile_context>

<pallas_src>
import jax
import jax.numpy as jnp
import numpy as np
from jax.experimental import pallas as pl
from jax.experimental.pallas import tpu as pltpu


def _fused_sepconv_kernel(xs_ref, dw_ref, pw_ref, o_ref):
    """Fused depthwise + pointwise conv for one batch element.

    xs_ref: (K, Cin, Hp, WL)  K W-shifted, zero-padded copies of this batch
                              element's input (WL = output row width padded to a
                              multiple of 128 lanes).  VMEM.
    dw_ref: (Cin, K*K)        depthwise weights (scalar reads).       SMEM.
    pw_ref: (Cout, Cin)       pointwise 1x1 weights (scalar reads).   SMEM.
    o_ref : (1, Cout, Ho, WL) NCHW output rows; columns >= Wo are garbage and are
                              cropped by the caller.                  VMEM.
    """
    K = xs_ref.shape[0]
    Cin = xs_ref.shape[1]
    Cout = o_ref.shape[1]
    Ho = o_ref.shape[2]
    WL = o_ref.shape[3]

    # ---- depthwise: one (Ho, WL) f32 accumulator per input channel (lives in
    # ---- vregs; never written to HBM).  Static unroll: channel counts are small.
    dw_out = []
    for c in range(Cin):
        acc = jnp.zeros((Ho, WL), jnp.float32)
        for kh in range(K):
            for kw in range(K):
                # kw is a leading index (pre-shifted copy) and kh is a sublane
                # offset, so this load is a plain unmasked (Ho, WL) slab.
                win = xs_ref[kw, c, kh:kh + Ho, :].astype(jnp.float32)
                acc = acc + win * dw_ref[c, kh * K + kw]
        dw_out.append(acc)

    # ---- pointwise 1x1: Cin-deep broadcast-FMA on the VPU, one lane-dense
    # ---- unmasked (Ho, WL) store per output channel (already NCHW).
    for co in range(Cout):
        row = dw_out[0] * pw_ref[co, 0]
        for c in range(1, Cin):
            row = row + dw_out[c] * pw_ref[co, c]
        o_ref[0, co] = row.astype(o_ref.dtype)


def separable_conv(x_nchw, dw_weight, pw_weight, *, padding=0):
    """SeparableConv forward pass (stride=1, dilation=1).

    x_nchw   : (N, Cin, H, W)     PyTorch NCHW input
    dw_weight: (Cin, 1, K, K)     conv1 weight (groups=Cin, depthwise)
    pw_weight: (Cout, Cin, 1, 1)  pointwise 1x1 weight
    returns  : (N, Cout, Ho, Wo)  NCHW, like PyTorch
    """
    N, Cin, H, W = x_nchw.shape
    K = dw_weight.shape[-1]
    Cout = pw_weight.shape[0]
    Hp = H + 2 * padding
    Wp = W + 2 * padding
    Ho = Hp - K + 1
    Wo = Wp - K + 1
    WL = ((Wo + 127) // 128) * 128          # lane-dense row width (mult. of 128)

    # TODO(synk): stride>1 / dilation>1 not implemented (module defaults are 1).

    # One pad pass: the conv's spatial zero padding plus right padding so every
    # W-shift below is a full WL-wide slab (extra zero columns only ever feed the
    # cropped lanes j >= Wo).
    right = (WL + K - 1) - W - padding
    xp = jnp.pad(x_nchw,
                 ((0, 0), (0, 0), (padding, padding), (padding, right)))

    # K lane-aligned W-shifted copies, folded into the leading dim so the kernel
    # block for grid step n is exactly batch n's K shifts: (K, Cin, Hp, WL).
    xs = jnp.stack([xp[:, :, :, kw:kw + WL] for kw in range(K)], axis=1)
    xs = xs.reshape(N * K, Cin, Hp, WL)

    dw = dw_weight[:, 0, :, :].reshape(Cin, K * K).astype(jnp.float32)  # SMEM
    pw = pw_weight[:, :, 0, 0].astype(jnp.float32)                      # SMEM

    out_padded = pl.pallas_call(
        _fused_sepconv_kernel,
        out_shape=jax.ShapeDtypeStruct((N, Cout, Ho, WL), x_nchw.dtype),
        grid_spec=pltpu.PrefetchScalarGridSpec(
            num_scalar_prefetch=0,
            grid=(N,),
            in_specs=[
                pl.BlockSpec((K, Cin, Hp, WL), lambda n: (n, 0, 0, 0)),
                pl.BlockSpec(memory_space=pltpu.MemorySpace.SMEM),  # dw scalars
                pl.BlockSpec(memory_space=pltpu.MemorySpace.SMEM),  # pw scalars
            ],
            out_specs=pl.BlockSpec((1, Cout, Ho, WL), lambda n: (n, 0, 0, 0)),
        ),
        compiler_params=pltpu.CompilerParams(
            dimension_semantics=("parallel",),          # v7x: 2 TCs split batch
            vmem_limit_bytes=32 * 1024 * 1024,
        ),
    )(xs, dw, pw)

    # Crop the lane padding; the result is already NCHW -- no transpose pass.
    return out_padded[:, :, :, :Wo]


def _reference(x_nchw, dw_weight, pw_weight, padding):
    """Pure-JAX reference matching torch.nn.Conv2d semantics."""
    y = jax.lax.conv_general_dilated(
        x_nchw, dw_weight, window_strides=(1, 1),
        padding=[(padding, padding), (padding, padding)],
        dimension_numbers=("NCHW", "OIHW", "NCHW"),
        feature_group_count=x_nchw.shape[1])
    y = jax.lax.conv_general_dilated(
        y, pw_weight, window_strides=(1, 1), padding="VALID",
        dimension_numbers=("NCHW", "OIHW", "NCHW"))
    return y


if __name__ == "__main__":
    # SeparableConv(nn.Conv2d, in_channels=4, out_channels=8,
    #               kernel_size=3, stride=1, padding=1, dilation=1, bias=False)
    N, Cin, Cout, H, W, K, PAD = 2, 4, 8, 16, 16, 3, 1

    key = jax.random.PRNGKey(0)
    kx, kdw, kpw = jax.random.split(key, 3)
    x = jax.random.normal(kx, (N, Cin, H, W), dtype=jnp.float32)
    dw_weight = jax.random.normal(kdw, (Cin, 1, K, K), dtype=jnp.float32) * 0.1
    pw_weight = jax.random.normal(kpw, (Cout, Cin, 1, 1), dtype=jnp.float32) * 0.1

    out = separable_conv(x, dw_weight, pw_weight, padding=PAD)
    out = jax.block_until_ready(out)

    ref = _reference(x, dw_weight, pw_weight, PAD)
    np.testing.assert_allclose(np.asarray(out), np.asarray(ref),
                               rtol=1e-4, atol=1e-5)
    assert out.shape == (N, Cout, H, W)
    print("KERNEL_OK")
</pallas_src>

<mosaic_0001>
module attributes {stable_mosaic.version = 11 : i64} {
  func.func @_fused_sepconv_kernel(%arg0: i32, %arg1: memref<3x4x18x128xf32, #tpu.memory_space<vmem>>, %arg2: memref<4x9xf32, #tpu.memory_space<smem>>, %arg3: memref<8x4xf32, #tpu.memory_space<smem>>, %arg4: memref<1x8x16x128xf32, #tpu.memory_space<vmem>>) attributes {dimension_semantics = [#tpu.dimension_semantics<parallel>], iteration_bounds = array<i64: 2>, scalar_prefetch = 0 : i64, scratch_operands = 0 : i64, tpu.core_type = #tpu.core_type<tc>, window_params = [{transform_indices = @transform_0, window_bounds = array<i64: 3, 4, 18, 128>}, {transform_indices = @transform_1, window_bounds = array<i64: 4, 9>}, {transform_indices = @transform_2, window_bounds = array<i64: 8, 4>}, {transform_indices = @transform_3, window_bounds = array<i64: 1, 8, 16, 128>}]} {
    %cst = arith.constant 0.000000e+00 : f32
    %0 = vector.broadcast %cst : f32 to vector<16x128xf32>
    %c0 = arith.constant 0 : index
    %c0_0 = arith.constant 0 : index
    %c0_1 = arith.constant 0 : index
    %c0_2 = arith.constant 0 : index
    %1 = vector.load %arg1[%c0, %c0_0, %c0_1, %c0_2] : memref<3x4x18x128xf32, #tpu.memory_space<vmem>>, vector<1x1x16x128xf32>
    %2 = vector.shape_cast %1 : vector<1x1x16x128xf32> to vector<16x128xf32>
    %c0_3 = arith.constant 0 : index
    %c0_4 = arith.constant 0 : index
    %3 = memref.load %arg2[%c0_3, %c0_4] : memref<4x9xf32, #tpu.memory_space<smem>>
    %4 = vector.broadcast %3 : f32 to vector<16x128xf32>
    %5 = arith.mulf %2, %4 : vector<16x128xf32>
    %6 = arith.addf %0, %5 : vector<16x128xf32>
    %c1 = arith.constant 1 : index
    %c0_5 = arith.constant 0 : index
    %c0_6 = arith.constant 0 : index
    %c0_7 = arith.constant 0 : index
    %7 = vector.load %arg1[%c1, %c0_5, %c0_6, %c0_7] : memref<3x4x18x128xf32, #tpu.memory_space<vmem>>, vector<1x1x16x128xf32>
    %8 = vector.shape_cast %7 : vector<1x1x16x128xf32> to vector<16x128xf32>
    %c0_8 = arith.constant 0 : index
    %c1_9 = arith.constant 1 : index
    %9 = memref.load %arg2[%c0_8, %c1_9] : memref<4x9xf32, #tpu.memory_space<smem>>
    %10 = vector.broadcast %9 : f32 to vector<16x128xf32>
    %11 = arith.mulf %8, %10 : vector<16x128xf32>
    %12 = arith.addf %6, %11 : vector<16x128xf32>
    %c2 = arith.constant 2 : index
    %c0_10 = arith.constant 0 : index
    %c0_11 = arith.constant 0 : index
    %c0_12 = arith.constant 0 : index
    %13 = vector.load %arg1[%c2, %c0_10, %c0_11, %c0_12] : memref<3x4x18x128xf32, #tpu.memory_space<vmem>>, vector<1x1x16x128xf32>
    %14 = vector.shape_cast %13 : vector<1x1x16x128xf32> to vector<16x128xf32>
    %c0_13 = arith.constant 0 : index
    %c2_14 = arith.constant 2 : index
    %15 = memref.load %arg2[%c0_13, %c2_14] : memref<4x9xf32, #tpu.memory_space<smem>>
    %16 = vector.broadcast %15 : f32 to vector<16x128xf32>
    %17 = arith.mulf %14, %16 : vector<16x128xf32>
    %18 = arith.addf %12, %17 : vector<16x128xf32>
    %c0_15 = arith.constant 0 : index
    %c0_16 = arith.constant 0 : index
    %c1_17 = arith.constant 1 : index
    %c0_18 = arith.constant 0 : index
    %19 = vector.load %arg1[%c0_15, %c0_16, %c1_17, %c0_18] : memref<3x4x18x128xf32, #tpu.memory_space<vmem>>, vector<1x1x16x128xf32>
    %20 = vector.shape_cast %19 : vector<1x1x16x128xf32> to vector<16x128xf32>
    %c0_19 = arith.constant 0 : index
    %c3 = arith.constant 3 : index
    %21 = memref.load %arg2[%c0_19, %c3] : memref<4x9xf32, #tpu.memory_space<smem>>
    %22 = vector.broadcast %21 : f32 to vector<16x128xf32>
    %23 = arith.mulf %20, %22 : vector<16x128xf32>
    %24 = arith.addf %18, %23 : vector<16x128xf32>
    %c1_20 = arith.constant 1 : index
    %c0_21 = arith.constant 0 : index
    %c1_22 = arith.constant 1 : index
    %c0_23 = arith.constant 0 : index
    %25 = vector.load %arg1[%c1_20, %c0_21, %c1_22, %c0_23] : memref<3x4x18x128xf32, #tpu.memory_space<vmem>>, vector<1x1x16x128xf32>
    %26 = vector.shape_cast %25 : vector<1x1x16x128xf32> to vector<16x128xf32>
    %c0_24 = arith.constant 0 : index
    %c4 = arith.constant 4 : index
    %27 = memref.load %arg2[%c0_24, %c4] : memref<4x9xf32, #tpu.memory_space<smem>>
    %28 = vector.broadcast %27 : f32 to vector<16x128xf32>
    %29 = arith.mulf %26, %28 : vector<16x128xf32>
    %30 = arith.addf %24, %29 : vector<16x128xf32>
    %c2_25 = arith.constant 2 : index
    %c0_26 = arith.constant 0 : index
    %c1_27 = arith.constant 1 : index
    %c0_28 = arith.constant 0 : index
    %31 = vector.load %arg1[%c2_25, %c0_26, %c1_27, %c0_28] : memref<3x4x18x128xf32, #tpu.memory_space<vmem>>, vector<1x1x16x128xf32>
    %32 = vector.shape_cast %31 : vector<1x1x16x128xf32> to vector<16x128xf32>
    %c0_29 = arith.constant 0 : index
    %c5 = arith.constant 5 : index
    %33 = memref.load %arg2[%c0_29, %c5] : memref<4x9xf32, #tpu.memory_space<smem>>
    %34 = vector.broadcast %33 : f32 to vector<16x128xf32>
    %35 = arith.mulf %32, %34 : vector<16x128xf32>
    %36 = arith.addf %30, %35 : vector<16x128xf32>
    %c0_30 = arith.constant 0 : index
    %c0_31 = arith.constant 0 : index
    %c2_32 = arith.constant 2 : index
    %c0_33 = arith.constant 0 : index
    %37 = vector.load %arg1[%c0_30, %c0_31, %c2_32, %c0_33] : memref<3x4x18x128xf32, #tpu.memory_space<vmem>>, vector<1x1x16x128xf32>
    %38 = vector.shape_cast %37 : vector<1x1x16x128xf32> to vector<16x128xf32>
    %c0_34 = arith.constant 0 : index
    %c6 = arith.constant 6 : index
    %39 = memref.load %arg2[%c0_34, %c6] : memref<4x9xf32, #tpu.memory_space<smem>>
    %40 = vector.broadcast %39 : f32 to vector<16x128xf32>
    %41 = arith.mulf %38, %40 : vector<16x128xf32>
    %42 = arith.addf %36, %41 : vector<16x128xf32>
    %c1_35 = arith.constant 1 : index
    %c0_36 = arith.constant 0 : index
    %c2_37 = arith.constant 2 : index
    %c0_38 = arith.constant 0 : index
    %43 = vector.load %arg1[%c1_35, %c0_36, %c2_37, %c0_38] : memref<3x4x18x128xf32, #tpu.memory_space<vmem>>, vector<1x1x16x128xf32>
    %44 = vector.shape_cast %43 : vector<1x1x16x128xf32> to vector<16x128xf32>
    %c0_39 = arith.constant 0 : index
    %c7 = arith.constant 7 : index
    %45 = memref.load %arg2[%c0_39, %c7] : memref<4x9xf32, #tpu.memory_space<smem>>
    %46 = vector.broadcast %45 : f32 to vector<16x128xf32>
    %47 = arith.mulf %44, %46 : vector<16x128xf32>
    %48 = arith.addf %42, %47 : vector<16x128xf32>
    %c2_40 = arith.constant 2 : index
    %c0_41 = arith.constant 0 : index
    %c2_42 = arith.constant 2 : index
    %c0_43 = arith.constant 0 : index
    %49 = vector.load %arg1[%c2_40, %c0_41, %c2_42, %c0_43] : memref<3x4x18x128xf32, #tpu.memory_space<vmem>>, vector<1x1x16x128xf32>
    %50 = vector.shape_cast %49 : vector<1x1x16x128xf32> to vector<16x128xf32>
    %c0_44 = arith.constant 0 : index
    %c8 = arith.constant 8 : index
    %51 = memref.load %arg2[%c0_44, %c8] : memref<4x9xf32, #tpu.memory_space<smem>>
    %52 = vector.broadcast %51 : f32 to vector<16x128xf32>
    %53 = arith.mulf %50, %52 : vector<16x128xf32>
    %54 = arith.addf %48, %53 : vector<16x128xf32>
    %cst_45 = arith.constant 0.000000e+00 : f32
    %55 = vector.broadcast %cst_45 : f32 to vector<16x128xf32>
    %c0_46 = arith.constant 0 : index
    %c1_47 = arith.constant 1 : index
    %c0_48 = arith.constant 0 : index
    %c0_49 = arith.constant 0 : index
    %56 = vector.load %arg1[%c0_46, %c1_47, %c0_48, %c0_49] : memref<3x4x18x128xf32, #tpu.memory_space<vmem>>, vector<1x1x16x128xf32>
    %57 = vector.shape_cast %56 : vector<1x1x16x128xf32> to vector<16x128xf32>
    %c1_50 = arith.constant 1 : index
    %c0_51 = arith.constant 0 : index
    %58 = memref.load %arg2[%c1_50, %c0_51] : memref<4x9xf32, #tpu.memory_space<smem>>
    %59 = vector.broadcast %58 : f32 to vector<16x128xf32>
    %60 = arith.mulf %57, %59 : vector<16x128xf32>
    %61 = arith.addf %55, %60 : vector<16x128xf32>
    %c1_52 = arith.constant 1 : index
    %c1_53 = arith.constant 1 : index
    %c0_54 = arith.constant 0 : index
    %c0_55 = arith.constant 0 : index
    %62 = vector.load %arg1[%c1_52, %c1_53, %c0_54, %c0_55] : memref<3x4x18x128xf32, #tpu.memory_space<vmem>>, vector<1x1x16x128xf32>
    %63 = vector.shape_cast %62 : vector<1x1x16x128xf32> to vector<16x128xf32>
    %c1_56 = arith.constant 1 : index
    %c1_57 = arith.constant 1 : index
    %64 = memref.load %arg2[%c1_56, %c1_57] : memref<4x9xf32, #tpu.memory_space<smem>>
    %65 = vector.broadcast %64 : f32 to vector<16x128xf32>
    %66 = arith.mulf %63, %65 : vector<16x128xf32>
    %67 = arith.addf %61, %66 : vector<16x128xf32>
    %c2_58 = arith.constant 2 : index
    %c1_59 = arith.constant 1 : index
    %c0_60 = arith.constant 0 : index
    %c0_61 = arith.constant 0 : index
    %68 = vector.load %arg1[%c2_58, %c1_59, %c0_60, %c0_61] : memref<3x4x18x128xf32, #tpu.memory_space<vmem>>, vector<1x1x16x128xf32>
    %69 = vector.shape_cast %68 : vector<1x1x16x128xf32> to vector<16x128xf32>
    %c1_62 = arith.constant 1 : index
    %c2_63 = arith.constant 2 : index
    %70 = memref.load %arg2[%c1_62, %c2_63] : memref<4x9xf32, #tpu.memory_space<smem>>
    %71 = vector.broadcast %70 : f32 to vector<16x128xf32>
    %72 = arith.mulf %69, %71 : vector<16x128xf32>
    %73 = arith.addf %67, %72 : vector<16x128xf32>
    %c0_64 = arith.constant 0 : index
    %c1_65 = arith.constant 1 : index
    %c1_66 = arith.constant 1 : index
    %c0_67 = arith.constant 0 : index
    %74 = vector.load %arg1[%c0_64, %c1_65, %c1_66, %c0_67] : memref<3x4x18x128xf32, #tpu.memory_space<vmem>>, vector<1x1x16x128xf32>
    %75 = vector.shape_cast %74 : vector<1x1x16x128xf32> to vector<16x128xf32>
    %c1_68 = arith.constant 1 : index
    %c3_69 = arith.constant 3 : index
    %76 = memref.load %arg2[%c1_68, %c3_69] : memref<4x9xf32, #tpu.memory_space<smem>>
    %77 = vector.broadcast %76 : f32 to vector<16x128xf32>
    %78 = arith.mulf %75, %77 : vector<16x128xf32>
    %79 = arith.addf %73, %78 : vector<16x128xf32>
    %c1_70 = arith.constant 1 : index
    %c1_71 = arith.constant 1 : index
    %c1_72 = arith.constant 1 : index
    %c0_73 = arith.constant 0 : index
    %80 = vector.load %arg1[%c1_70, %c1_71, %c1_72, %c0_73] : memref<3x4x18x128xf32, #tpu.memory_space<vmem>>, vector<1x1x16x128xf32>
    %81 = vector.shape_cast %80 : vector<1x1x16x128xf32> to vector<16x128xf32>
    %c1_74 = arith.constant 1 : index
    %c4_75 = arith.constant 4 : index
    %82 = memref.load %arg2[%c1_74, %c4_75] : memref<4x9xf32, #tpu.memory_space<smem>>
    %83 = vector.broadcast %82 : f32 to vector<16x128xf32>
    %84 = arith.mulf %81, %83 : vector<16x128xf32>
    %85 = arith.addf %79, %84 : vector<16x128xf32>
    %c2_76 = arith.constant 2 : index
    %c1_77 = arith.constant 1 : index
    %c1_78 = arith.constant 1 : index
    %c0_79 = arith.constant 0 : index
    %86 = vector.load %arg1[%c2_76, %c1_77, %c1_78, %c0_79] : memref<3x4x18x128xf32, #tpu.memory_space<vmem>>, vector<1x1x16x128xf32>
    %87 = vector.shape_cast %86 : vector<1x1x16x128xf32> to vector<16x128xf32>
    %c1_80 = arith.constant 1 : index
    %c5_81 = arith.constant 5 : index
    %88 = memref.load %arg2[%c1_80, %c5_81] : memref<4x9xf32, #tpu.memory_space<smem>>
    %89 = vector.broadcast %88 : f32 to vector<16x128xf32>
    %90 = arith.mulf %87, %89 : vector<16x128xf32>
    %91 = arith.addf %85, %90 : vector<16x128xf32>
    %c0_82 = arith.constant 0 : index
    %c1_83 = arith.constant 1 : index
    %c2_84 = arith.constant 2 : index
    %c0_85 = arith.constant 0 : index
    %92 = vector.load %arg1[%c0_82, %c1_83, %c2_84, %c0_85] : memref<3x4x18x128xf32, #tpu.memory_space<vmem>>, vector<1x1x16x128xf32>
    %93 = vector.shape_cast %92 : vector<1x1x16x128xf32> to vector<16x128xf32>
    %c1_86 = arith.constant 1 : index
    %c6_87 = arith.constant 6 : index
    %94 = memref.load %arg2[%c1_86, %c6_87] : memref<4x9xf32, #tpu.memory_space<smem>>
    %95 = vector.broadcast %94 : f32 to vector<16x128xf32>
    %96 = arith.mulf %93, %95 : vector<16x128xf32>
    %97 = arith.addf %91, %96 : vector<16x128xf32>
    %c1_88 = arith.constant 1 : index
    %c1_89 = arith.constant 1 : index
    %c2_90 = arith.constant 2 : index
    %c0_91 = arith.constant 0 : index
    %98 = vector.load %arg1[%c1_88, %c1_89, %c2_90, %c0_91] : memref<3x4x18x128xf32, #tpu.memory_space<vmem>>, vector<1x1x16x128xf32>
    %99 = vector.shape_cast %98 : vector<1x1x16x128xf32> to vector<16x128xf32>
    %c1_92 = arith.constant 1 : index
    %c7_93 = arith.constant 7 : index
    %100 = memref.load %arg2[%c1_92, %c7_93] : memref<4x9xf32, #tpu.memory_space<smem>>
    %101 = vector.broadcast %100 : f32 to vector<16x128xf32>
    %102 = arith.mulf %99, %101 : vector<16x128xf32>
    %103 = arith.addf %97, %102 : vector<16x128xf32>
    %c2_94 = arith.constant 2 : index
    %c1_95 = arith.constant 1 : index
    %c2_96 = arith.constant 2 : index
    %c0_97 = arith.constant 0 : index
    %104 = vector.load %arg1[%c2_94, %c1_95, %c2_96, %c0_97] : memref<3x4x18x128xf32, #tpu.memory_space<vmem>>, vector<1x1x16x128xf32>
    %105 = vector.shape_cast %104 : vector<1x1x16x128xf32> to vector<16x128xf32>
    %c1_98 = arith.constant 1 : index
    %c8_99 = arith.constant 8 : index
    %106 = memref.load %arg2[%c1_98, %c8_99] : memref<4x9xf32, #tpu.memory_space<smem>>
    %107 = vector.broadcast %106 : f32 to vector<16x128xf32>
    %108 = arith.mulf %105, %107 : vector<16x128xf32>
    %109 = arith.addf %103, %108 : vector<16x128xf32>
    %cst_100 = arith.constant 0.000000e+00 : f32
    %110 = vector.broadcast %cst_100 : f32 to vector<16x128xf32>
    %c0_101 = arith.constant 0 : index
    %c2_102 = arith.constant 2 : index
    %c0_103 = arith.constant 0 : index
    %c0_104 = arith.constant 0 : index
    %111 = vector.load %arg1[%c0_101, %c2_102, %c0_103, %c0_104] : memref<3x4x18x128xf32, #tpu.memory_space<vmem>>, vector<1x1x16x128xf32>
    %112 = vector.shape_cast %111 : vector<1x1x16x128xf32> to vector<16x128xf32>
    %c2_105 = arith.constant 2 : index
    %c0_106 = arith.constant 0 : index
    %113 = memref.load %arg2[%c2_105, %c0_106] : memref<4x9xf32, #tpu.memory_space<smem>>
    %114 = vector.broadcast %113 : f32 to vector<16x128xf32>
    %115 = arith.mulf %112, %114 : vector<16x128xf32>
    %116 = arith.addf %110, %115 : vector<16x128xf32>
    %c1_107 = arith.constant 1 : index
    %c2_108 = arith.constant 2 : index
    %c0_109 = arith.constant 0 : index
    %c0_110 = arith.constant 0 : index
    %117 = vector.load %arg1[%c1_107, %c2_108, %c0_109, %c0_110] : memref<3x4x18x128xf32, #tpu.memory_space<vmem>>, vector<1x1x16x128xf32>
    %118 = vector.shape_cast %117 : vector<1x1x16x128xf32> to vector<16x128xf32>
    %c2_111 = arith.constant 2 : index
    %c1_112 = arith.constant 1 : index
    %119 = memref.load %arg2[%c2_111, %c1_112] : memref<4x9xf32, #tpu.memory_space<smem>>
    %120 = vector.broadcast %119 : f32 to vector<16x128xf32>
    %121 = arith.mulf %118, %120 : vector<16x128xf32>
    %122 = arith.addf %116, %121 : vector<16x128xf32>
    %c2_113 = arith.constant 2 : index
    %c2_114 = arith.constant 2 : index
    %c0_115 = arith.constant 0 : index
    %c0_116 = arith.constant 0 : index
    %123 = vector.load %arg1[%c2_113, %c2_114, %c0_115, %c0_116] : memref<3x4x18x128xf32, #tpu.memory_space<vmem>>, vector<1x1x16x128xf32>
    %124 = vector.shape_cast %123 : vector<1x1x16x128xf32> to vector<16x128xf32>
    %c2_117 = arith.constant 2 : index
    %c2_118 = arith.constant 2 : index
    %125 = memref.load %arg2[%c2_117, %c2_118] : memref<4x9xf32, #tpu.memory_space<smem>>
    %126 = vector.broadcast %125 : f32 to vector<16x128xf32>
    %127 = arith.mulf %124, %126 : vector<16x128xf32>
    %128 = arith.addf %122, %127 : vector<16x128xf32>
    %c0_119 = arith.constant 0 : index
    %c2_120 = arith.constant 2 : index
    %c1_121 = arith.constant 1 : index
    %c0_122 = arith.constant 0 : index
    %129 = vector.load %arg1[%c0_119, %c2_120, %c1_121, %c0_122] : memref<3x4x18x128xf32, #tpu.memory_space<vmem>>, vector<1x1x16x128xf32>
    %130 = vector.shape_cast %129 : vector<1x1x16x128xf32> to vector<16x128xf32>
    %c2_123 = arith.constant 2 : index
    %c3_124 = arith.constant 3 : index
    %131 = memref.load %arg2[%c2_123, %c3_124] : memref<4x9xf32, #tpu.memory_space<smem>>
    %132 = vector.broadcast %131 : f32 to vector<16x128xf32>
    %133 = arith.mulf %130, %132 : vector<16x128xf32>
    %134 = arith.addf %128, %133 : vector<16x128xf32>
    %c1_125 = arith.constant 1 : index
    %c2_126 = arith.constant 2 : index
    %c1_127 = arith.constant 1 : index
    %c0_128 = arith.constant 0 : index
    %135 = vector.load %arg1[%c1_125, %c2_126, %c1_127, %c0_128] : memref<3x4x18x128xf32, #tpu.memory_space<vmem>>, vector<1x1x16x128xf32>
    %136 = vector.shape_cast %135 : vector<1x1x16x128xf32> to vector<16x128xf32>
    %c2_129 = arith.constant 2 : index
    %c4_130 = arith.constant 4 : index
    %137 = memref.load %arg2[%c2_129, %c4_130] : memref<4x9xf32, #tpu.memory_space<smem>>
    %138 = vector.broadcast %137 : f32 to vector<16x128xf32>
    %139 = arith.mulf %136, %138 : vector<16x128xf32>
    %140 = arith.addf %134, %139 : vector<16x128xf32>
    %c2_131 = arith.constant 2 : index
    %c2_132 = arith.constant 2 : index
    %c1_133 = arith.constant 1 : index
    %c0_134 = arith.constant 0 : index
    %141 = vector.load %arg1[%c2_131, %c2_132, %c1_133, %c0_134] : memref<3x4x18x128xf32, #tpu.memory_space<vmem>>, vector<1x1x16x128xf32>
    %142 = vector.shape_cast %141 : vector<1x1x16x128xf32> to vector<16x128xf32>
    %c2_135 = arith.constant 2 : index
    %c5_136 = arith.constant 5 : index
    %143 = memref.load %arg2[%c2_135, %c5_136] : memref<4x9xf32, #tpu.memory_space<smem>>
    %144 = vector.broadcast %143 : f32 to vector<16x128xf32>
    %145 = arith.mulf %142, %144 : vector<16x128xf32>
    %146 = arith.addf %140, %145 : vector<16x128xf32>
    %c0_137 = arith.constant 0 : index
    %c2_138 = arith.constant 2 : index
    %c2_139 = arith.constant 2 : index
    %c0_140 = arith.constant 0 : index
    %147 = vector.load %arg1[%c0_137, %c2_138, %c2_139, %c0_140] : memref<3x4x18x128xf32, #tpu.memory_space<vmem>>, vector<1x1x16x128xf32>
    %148 = vector.shape_cast %147 : vector<1x1x16x128xf32> to vector<16x128xf32>
    %c2_141 = arith.constant 2 : index
    %c6_142 = arith.constant 6 : index
    %149 = memref.load %arg2[%c2_141, %c6_142] : memref<4x9xf32, #tpu.memory_space<smem>>
    %150 = vector.broadcast %149 : f32 to vector<16x128xf32>
    %151 = arith.mulf %148, %150 : vector<16x128xf32>
    %152 = arith.addf %146, %151 : vector<16x128xf32>
    %c1_143 = arith.constant 1 : index
    %c2_144 = arith.constant 2 : index
    %c2_145 = arith.constant 2 : index
    %c0_146 = arith.constant 0 : index
    %153 = vector.load %arg1[%c1_143, %c2_144, %c2_145, %c0_146] : memref<3x4x18x128xf32, #tpu.memory_space<vmem>>, vector<1x1x16x128xf32>
    %154 = vector.shape_cast %153 : vector<1x1x16x128xf32> to vector<16x128xf32>
    %c2_147 = arith.constant 2 : index
    %c7_148 = arith.constant 7 : index
    %155 = memref.load %arg2[%c2_147, %c7_148] : memref<4x9xf32, #tpu.memory_space<smem>>
    %156 = vector.broadcast %155 : f32 to vector<16x128xf32>
    %157 = arith.mulf %154, %156 : vector<16x128xf32>
    %158 = arith.addf %152, %157 : vector<16x128xf32>
    %c2_149 = arith.constant 2 : index
    %c2_150 = arith.constant 2 : index
    %c2_151 = arith.constant 2 : index
    %c0_152 = arith.constant 0 : index
    %159 = vector.load %arg1[%c2_149, %c2_150, %c2_151, %c0_152] : memref<3x4x18x128xf32, #tpu.memory_space<vmem>>, vector<1x1x16x128xf32>
    %160 = vector.shape_cast %159 : vector<1x1x16x128xf32> to vector<16x128xf32>
    %c2_153 = arith.constant 2 : index
    %c8_154 = arith.constant 8 : index
    %161 = memref.load %arg2[%c2_153, %c8_154] : memref<4x9xf32, #tpu.memory_space<smem>>
    %162 = vector.broadcast %161 : f32 to vector<16x128xf32>
    %163 = arith.mulf %160, %162 : vector<16x128xf32>
    %164 = arith.addf %158, %163 : vector<16x128xf32>
    %cst_155 = arith.constant 0.000000e+00 : f32
    %165 = vector.broadcast %cst_155 : f32 to vector<16x128xf32>
    %c0_156 = arith.constant 0 : index
    %c3_157 = arith.constant 3 : index
    %c0_158 = arith.constant 0 : index
    %c0_159 = arith.constant 0 : index
    %166 = vector.load %arg1[%c0_156, %c3_157, %c0_158, %c0_159] : memref<3x4x18x128xf32, #tpu.memory_space<vmem>>, vector<1x1x16x128xf32>
    %167 = vector.shape_cast %166 : vector<1x1x16x128xf32> to vector<16x128xf32>
    %c3_160 = arith.constant 3 : index
    %c0_161 = arith.constant 0 : index
    %168 = memref.load %arg2[%c3_160, %c0_161] : memref<4x9xf32, #tpu.memory_space<smem>>
    %169 = vector.broadcast %168 : f32 to vector<16x128xf32>
    %170 = arith.mulf %167, %169 : vector<16x128xf32>
    %171 = arith.addf %165, %170 : vector<16x128xf32>
    %c1_162 = arith.constant 1 : index
    %c3_163 = arith.constant 3 : index
    %c0_164 = arith.constant 0 : index
    %c0_165 = arith.constant 0 : index
    %172 = vector.load %arg1[%c1_162, %c3_163, %c0_164, %c0_165] : memref<3x4x18x128xf32, #tpu.memory_space<vmem>>, vector<1x1x16x128xf32>
    %173 = vector.shape_cast %172 : vector<1x1x16x128xf32> to vector<16x128xf32>
    %c3_166 = arith.constant 3 : index
    %c1_167 = arith.constant 1 : index
    %174 = memref.load %arg2[%c3_166, %c1_167] : memref<4x9xf32, #tpu.memory_space<smem>>
    %175 = vector.broadcast %174 : f32 to vector<16x128xf32>
    %176 = arith.mulf %173, %175 : vector<16x128xf32>
    %177 = arith.addf %171, %176 : vector<16x128xf32>
    %c2_168 = arith.constant 2 : index
    %c3_169 = arith.constant 3 : index
    %c0_170 = arith.constant 0 : index
    %c0_171 = arith.constant 0 : index
    %178 = vector.load %arg1[%c2_168, %c3_169, %c0_170, %c0_171] : memref<3x4x18x128xf32, #tpu.memory_space<vmem>>, vector<1x1x16x128xf32>
    %179 = vector.shape_cast %178 : vector<1x1x16x128xf32> to vector<16x128xf32>
    %c3_172 = arith.constant 3 : index
    %c2_173 = arith.constant 2 : index
    %180 = memref.load %arg2[%c3_172, %c2_173] : memref<4x9xf32, #tpu.memory_space<smem>>
    %181 = vector.broadcast %180 : f32 to vector<16x128xf32>
    %182 = arith.mulf %179, %181 : vector<16x128xf32>
    %183 = arith.addf %177, %182 : vector<16x128xf32>
    %c0_174 = arith.constant 0 : index
    %c3_175 = arith.constant 3 : index
    %c1_176 = arith.constant 1 : index
    %c0_177 = arith.constant 0 : index
    %184 = vector.load %arg1[%c0_174, %c3_175, %c1_176, %c0_177] : memref<3x4x18x128xf32, #tpu.memory_space<vmem>>, vector<1x1x16x128xf32>
    %185 = vector.shape_cast %184 : vector<1x1x16x128xf32> to vector<16x128xf32>
    %c3_178 = arith.constant 3 : index
    %c3_179 = arith.constant 3 : index
    %186 = memref.load %arg2[%c3_178, %c3_179] : memref<4x9xf32, #tpu.memory_space<smem>>
    %187 = vector.broadcast %186 : f32 to vector<16x128xf32>
    %188 = arith.mulf %185, %187 : vector<16x128xf32>
    %189 = arith.addf %183, %188 : vector<16x128xf32>
    %c1_180 = arith.constant 1 : index
    %c3_181 = arith.constant 3 : index
    %c1_182 = arith.constant 1 : index
    %c0_183 = arith.constant 0 : index
    %190 = vector.load %arg1[%c1_180, %c3_181, %c1_182, %c0_183] : memref<3x4x18x128xf32, #tpu.memory_space<vmem>>, vector<1x1x16x128xf32>
    %191 = vector.shape_cast %190 : vector<1x1x16x128xf32> to vector<16x128xf32>
    %c3_184 = arith.constant 3 : index
    %c4_185 = arith.constant 4 : index
    %192 = memref.load %arg2[%c3_184, %c4_185] : memref<4x9xf32, #tpu.memory_space<smem>>
    %193 = vector.broadcast %192 : f32 to vector<16x128xf32>
    %194 = arith.mulf %191, %193 : vector<16x128xf32>
    %195 = arith.addf %189, %194 : vector<16x128xf32>
    %c2_186 = arith.constant 2 : index
    %c3_187 = arith.constant 3 : index
    %c1_188 = arith.constant 1 : index
    %c0_189 = arith.constant 0 : index
    %196 = vector.load %arg1[%c2_186, %c3_187, %c1_188, %c0_189] : memref<3x4x18x128xf32, #tpu.memory_space<vmem>>, vector<1x1x16x128xf32>
    %197 = vector.shape_cast %196 : vector<1x1x16x128xf32> to vector<16x128xf32>
    %c3_190 = arith.constant 3 : index
    %c5_191 = arith.constant 5 : index
    %198 = memref.load %arg2[%c3_190, %c5_191] : memref<4x9xf32, #tpu.memory_space<smem>>
    %199 = vector.broadcast %198 : f32 to vector<16x128xf32>
    %200 = arith.mulf %197, %199 : vector<16x128xf32>
    %201 = arith.addf %195, %200 : vector<16x128xf32>
    %c0_192 = arith.constant 0 : index
    %c3_193 = arith.constant 3 : index
    %c2_194 = arith.constant 2 : index
    %c0_195 = arith.constant 0 : index
    %202 = vector.load %arg1[%c0_192, %c3_193, %c2_194, %c0_195] : memref<3x4x18x128xf32, #tpu.memory_space<vmem>>, vector<1x1x16x128xf32>
    %203 = vector.shape_cast %202 : vector<1x1x16x128xf32> to vector<16x128xf32>
    %c3_196 = arith.constant 3 : index
    %c6_197 = arith.constant 6 : index
    %204 = memref.load %arg2[%c3_196, %c6_197] : memref<4x9xf32, #tpu.memory_space<smem>>
    %205 = vector.broadcast %204 : f32 to vector<16x128xf32>
    %206 = arith.mulf %203, %205 : vector<16x128xf32>
    %207 = arith.addf %201, %206 : vector<16x128xf32>
    %c1_198 = arith.constant 1 : index
    %c3_199 = arith.constant 3 : index
    %c2_200 = arith.constant 2 : index
    %c0_201 = arith.constant 0 : index
    %208 = vector.load %arg1[%c1_198, %c3_199, %c2_200, %c0_201] : memref<3x4x18x128xf32, #tpu.memory_space<vmem>>, vector<1x1x16x128xf32>
    %209 = vector.shape_cast %208 : vector<1x1x16x128xf32> to vector<16x128xf32>
    %c3_202 = arith.constant 3 : index
    %c7_203 = arith.constant 7 : index
    %210 = memref.load %arg2[%c3_202, %c7_203] : memref<4x9xf32, #tpu.memory_space<smem>>
    %211 = vector.broadcast %210 : f32 to vector<16x128xf32>
    %212 = arith.mulf %209, %211 : vector<16x128xf32>
    %213 = arith.addf %207, %212 : vector<16x128xf32>
    %c2_204 = arith.constant 2 : index
    %c3_205 = arith.constant 3 : index
    %c2_206 = arith.constant 2 : index
    %c0_207 = arith.constant 0 : index
    %214 = vector.load %arg1[%c2_204, %c3_205, %c2_206, %c0_207] : memref<3x4x18x128xf32, #tpu.memory_space<vmem>>, vector<1x1x16x128xf32>
    %215 = vector.shape_cast %214 : vector<1x1x16x128xf32> to vector<16x128xf32>
    %c3_208 = arith.constant 3 : index
    %c8_209 = arith.constant 8 : index
    %216 = memref.load %arg2[%c3_208, %c8_209] : memref<4x9xf32, #tpu.memory_space<smem>>
    %217 = vector.broadcast %216 : f32 to vector<16x128xf32>
    %218 = arith.mulf %215, %217 : vector<16x128xf32>
    %219 = arith.addf %213, %218 : vector<16x128xf32>
    %c0_210 = arith.constant 0 : index
    %c0_211 = arith.constant 0 : index
    %220 = memref.load %arg3[%c0_210, %c0_211] : memref<8x4xf32, #tpu.memory_space<smem>>
    %221 = vector.broadcast %220 : f32 to vector<16x128xf32>
    %222 = arith.mulf %54, %221 : vector<16x128xf32>
    %c0_212 = arith.constant 0 : index
    %c1_213 = arith.constant 1 : index
    %223 = memref.load %arg3[%c0_212, %c1_213] : memref<8x4xf32, #tpu.memory_space<smem>>
    %224 = vector.broadcast %223 : f32 to vector<16x128xf32>
    %225 = arith.mulf %109, %224 : vector<16x128xf32>
    %226 = arith.addf %222, %225 : vector<16x128xf32>
    %c0_214 = arith.constant 0 : index
    %c2_215 = arith.constant 2 : index
    %227 = memref.load %arg3[%c0_214, %c2_215] : memref<8x4xf32, #tpu.memory_space<smem>>
    %228 = vector.broadcast %227 : f32 to vector<16x128xf32>
    %229 = arith.mulf %164, %228 : vector<16x128xf32>
    %230 = arith.addf %226, %229 : vector<16x128xf32>
    %c0_216 = arith.constant 0 : index
    %c3_217 = arith.constant 3 : index
    %231 = memref.load %arg3[%c0_216, %c3_217] : memref<8x4xf32, #tpu.memory_space<smem>>
    %232 = vector.broadcast %231 : f32 to vector<16x128xf32>
    %233 = arith.mulf %219, %232 : vector<16x128xf32>
    %234 = arith.addf %230, %233 : vector<16x128xf32>
    %c0_218 = arith.constant 0 : index
    %c0_219 = arith.constant 0 : index
    %c0_220 = arith.constant 0 : index
    %c0_221 = arith.constant 0 : index
    %235 = vector.load %arg4[%c0_218, %c0_219, %c0_220, %c0_221] : memref<1x8x16x128xf32, #tpu.memory_space<vmem>>, vector<1x1x16x128xf32>
    %236 = vector.shape_cast %235 : vector<1x1x16x128xf32> to vector<16x128xf32>
    %237 = vector.shape_cast %234 : vector<16x128xf32> to vector<1x1x16x128xf32>
    tpu.vector_store %arg4[%c0_218, %c0_219, %c0_220, %c0_221], %237 {strides = array<i32>} : memref<1x8x16x128xf32, #tpu.memory_space<vmem>>, vector<1x1x16x128xf32>,
    %c1_222 = arith.constant 1 : index
    %c0_223 = arith.constant 0 : index
    %238 = memref.load %arg3[%c1_222, %c0_223] : memref<8x4xf32, #tpu.memory_space<smem>>
    %239 = vector.broadcast %238 : f32 to vector<16x128xf32>
    %240 = arith.mulf %54, %239 : vector<16x128xf32>
    %c1_224 = arith.constant 1 : index
    %c1_225 = arith.constant 1 : index
    %241 = memref.load %arg3[%c1_224, %c1_225] : memref<8x4xf32, #tpu.memory_space<smem>>
    %242 = vector.broadcast %241 : f32 to vector<16x128xf32>
    %243 = arith.mulf %109, %242 : vector<16x128xf32>
    %244 = arith.addf %240, %243 : vector<16x128xf32>
    %c1_226 = arith.constant 1 : index
    %c2_227 = arith.constant 2 : index
    %245 = memref.load %arg3[%c1_226, %c2_227] : memref<8x4xf32, #tpu.memory_space<smem>>
    %246 = vector.broadcast %245 : f32 to vector<16x128xf32>
    %247 = arith.mulf %164, %246 : vector<16x128xf32>
    %248 = arith.addf %244, %247 : vector<16x128xf32>
    %c1_228 = arith.constant 1 : index
    %c3_229 = arith.constant 3 : index
    %249 = memref.load %arg3[%c1_228, %c3_229] : memref<8x4xf32, #tpu.memory_space<smem>>
    %250 = vector.broadcast %249 : f32 to vector<16x128xf32>
    %251 = arith.mulf %219, %250 : vector<16x128xf32>
    %252 = arith.addf %248, %251 : vector<16x128xf32>
    %c0_230 = arith.constant 0 : index
    %c1_231 = arith.constant 1 : index
    %c0_232 = arith.constant 0 : index
    %c0_233 = arith.constant 0 : index
    %253 = vector.load %arg4[%c0_230, %c1_231, %c0_232, %c0_233] : memref<1x8x16x128xf32, #tpu.memory_space<vmem>>, vector<1x1x16x128xf32>
    %254 = vector.shape_cast %253 : vector<1x1x16x128xf32> to vector<16x128xf32>
    %255 = vector.shape_cast %252 : vector<16x128xf32> to vector<1x1x16x128xf32>
    tpu.vector_store %arg4[%c0_230, %c1_231, %c0_232, %c0_233], %255 {strides = array<i32>} : memref<1x8x16x128xf32, #tpu.memory_space<vmem>>, vector<1x1x16x128xf32>,
    %c2_234 = arith.constant 2 : index
    %c0_235 = arith.constant 0 : index
    %256 = memref.load %arg3[%c2_234, %c0_235] : memref<8x4xf32, #tpu.memory_space<smem>>
    %257 = vector.broadcast %256 : f32 to vector<16x128xf32>
    %258 = arith.mulf %54, %257 : vector<16x128xf32>
    %c2_236 = arith.constant 2 : index
    %c1_237 = arith.constant 1 : index
    %259 = memref.load %arg3[%c2_236, %c1_237] : memref<8x4xf32, #tpu.memory_space<smem>>
    %260 = vector.broadcast %259 : f32 to vector<16x128xf32>
    %261 = arith.mulf %109, %260 : vector<16x128xf32>
    %262 = arith.addf %258, %261 : vector<16x128xf32>
    %c2_238 = arith.constant 2 : index
    %c2_239 = arith.constant 2 : index
    %263 = memref.load %arg3[%c2_238, %c2_239] : memref<8x4xf32, #tpu.memory_space<smem>>
    %264 = vector.broadcast %263 : f32 to vector<16x128xf32>
    %265 = arith.mulf %164, %264 : vector<16x128xf32>
    %266 = arith.addf %262, %265 : vector<16x128xf32>
    %c2_240 = arith.constant 2 : index
    %c3_241 = arith.constant 3 : index
    %267 = memref.load %arg3[%c2_240, %c3_241] : memref<8x4xf32, #tpu.memory_space<smem>>
    %268 = vector.broadcast %267 : f32 to vector<16x128xf32>
    %269 = arith.mulf %219, %268 : vector<16x128xf32>
    %270 = arith.addf %266, %269 : vector<16x128xf32>
    %c0_242 = arith.constant 0 : index
    %c2_243 = arith.constant 2 : index
    %c0_244 = arith.constant 0 : index
    %c0_245 = arith.constant 0 : index
    %271 = vector.load %arg4[%c0_242, %c2_243, %c0_244, %c0_245] : memref<1x8x16x128xf32, #tpu.memory_space<vmem>>, vector<1x1x16x128xf32>
    %272 = vector.shape_cast %271 : vector<1x1x16x128xf32> to vector<16x128xf32>
    %273 = vector.shape_cast %270 : vector<16x128xf32> to vector<1x1x16x128xf32>
    tpu.vector_store %arg4[%c0_242, %c2_243, %c0_244, %c0_245], %273 {strides = array<i32>} : memref<1x8x16x128xf32, #tpu.memory_space<vmem>>, vector<1x1x16x128xf32>,
    %c3_246 = arith.constant 3 : index
    %c0_247 = arith.constant 0 : index
    %274 = memref.load %arg3[%c3_246, %c0_247] : memref<8x4xf32, #tpu.memory_space<smem>>
    %275 = vector.broadcast %274 : f32 to vector<16x128xf32>
    %276 = arith.mulf %54, %275 : vector<16x128xf32>
    %c3_248 = arith.constant 3 : index
    %c1_249 = arith.constant 1 : index
    %277 = memref.load %arg3[%c3_248, %c1_249] : memref<8x4xf32, #tpu.memory_space<smem>>
    %278 = vector.broadcast %277 : f32 to vector<16x128xf32>
    %279 = arith.mulf %109, %278 : vector<16x128xf32>
    %280 = arith.addf %276, %279 : vector<16x128xf32>
    %c3_250 = arith.constant 3 : index
    %c2_251 = arith.constant 2 : index
    %281 = memref.load %arg3[%c3_250, %c2_251] : memref<8x4xf32, #tpu.memory_space<smem>>
    %282 = vector.broadcast %281 : f32 to vector<16x128xf32>
    %283 = arith.mulf %164, %282 : vector<16x128xf32>
    %284 = arith.addf %280, %283 : vector<16x128xf32>
    %c3_252 = arith.constant 3 : index
    %c3_253 = arith.constant 3 : index
    %285 = memref.load %arg3[%c3_252, %c3_253] : memref<8x4xf32, #tpu.memory_space<smem>>
    %286 = vector.broadcast %285 : f32 to vector<16x128xf32>
    %287 = arith.mulf %219, %286 : vector<16x128xf32>
    %288 = arith.addf %284, %287 : vector<16x128xf32>
    %c0_254 = arith.constant 0 : index
    %c3_255 = arith.constant 3 : index
    %c0_256 = arith.constant 0 : index
    %c0_257 = arith.constant 0 : index
    %289 = vector.load %arg4[%c0_254, %c3_255, %c0_256, %c0_257] : memref<1x8x16x128xf32, #tpu.memory_space<vmem>>, vector<1x1x16x128xf32>
    %290 = vector.shape_cast %289 : vector<1x1x16x128xf32> to vector<16x128xf32>
    %291 = vector.shape_cast %288 : vector<16x128xf32> to vector<1x1x16x128xf32>
    tpu.vector_store %arg4[%c0_254, %c3_255, %c0_256, %c0_257], %291 {strides = array<i32>} : memref<1x8x16x128xf32, #tpu.memory_space<vmem>>, vector<1x1x16x128xf32>,
    %c4_258 = arith.constant 4 : index
    %c0_259 = arith.constant 0 : index
    %292 = memref.load %arg3[%c4_258, %c0_259] : memref<8x4xf32, #tpu.memory_space<smem>>
    %293 = vector.broadcast %292 : f32 to vector<16x128xf32>
    %294 = arith.mulf %54, %293 : vector<16x128xf32>
    %c4_260 = arith.constant 4 : index
    %c1_261 = arith.constant 1 : index
    %295 = memref.load %arg3[%c4_260, %c1_261] : memref<8x4xf32, #tpu.memory_space<smem>>
    %296 = vector.broadcast %295 : f32 to vector<16x128xf32>
    %297 = arith.mulf %109, %296 : vector<16x128xf32>
    %298 = arith.addf %294, %297 : vector<16x128xf32>
    %c4_262 = arith.constant 4 : index
    %c2_263 = arith.constant 2 : index
    %299 = memref.load %arg3[%c4_262, %c2_263] : memref<8x4xf32, #tpu.memory_space<smem>>
    %300 = vector.broadcast %299 : f32 to vector<16x128xf32>
    %301 = arith.mulf %164, %300 : vector<16x128xf32>
    %302 = arith.addf %298, %301 : vector<16x128xf32>
    %c4_264 = arith.constant 4 : index
    %c3_265 = arith.constant 3 : index
    %303 = memref.load %arg3[%c4_264, %c3_265] : memref<8x4xf32, #tpu.memory_space<smem>>
    %304 = vector.broadcast %303 : f32 to vector<16x128xf32>
    %305 = arith.mulf %219, %304 : vector<16x128xf32>
    %306 = arith.addf %302, %305 : vector<16x128xf32>
    %c0_266 = arith.constant 0 : index
    %c4_267 = arith.constant 4 : index
    %c0_268 = arith.constant 0 : index
    %c0_269 = arith.constant 0 : index
    %307 = vector.load %arg4[%c0_266, %c4_267, %c0_268, %c0_269] : memref<1x8x16x128xf32, #tpu.memory_space<vmem>>, vector<1x1x16x128xf32>
    %308 = vector.shape_cast %307 : vector<1x1x16x128xf32> to vector<16x128xf32>
    %309 = vector.shape_cast %306 : vector<16x128xf32> to vector<1x1x16x128xf32>
    tpu.vector_store %arg4[%c0_266, %c4_267, %c0_268, %c0_269], %309 {strides = array<i32>} : memref<1x8x16x128xf32, #tpu.memory_space<vmem>>, vector<1x1x16x128xf32>,
    %c5_270 = arith.constant 5 : index
    %c0_271 = arith.constant 0 : index
    %310 = memref.load %arg3[%c5_270, %c0_271] : memref<8x4xf32, #tpu.memory_space<smem>>
    %311 = vector.broadcast %310 : f32 to vector<16x128xf32>
    %312 = arith.mulf %54, %311 : vector<16x128xf32>
    %c5_272 = arith.constant 5 : index
    %c1_273 = arith.constant 1 : index
    %313 = memref.load %arg3[%c5_272, %c1_273] : memref<8x4xf32, #tpu.memory_space<smem>>
    %314 = vector.broadcast %313 : f32 to vector<16x128xf32>
    %315 = arith.mulf %109, %314 : vector<16x128xf32>
    %316 = arith.addf %312, %315 : vector<16x128xf32>
    %c5_274 = arith.constant 5 : index
    %c2_275 = arith.constant 2 : index
    %317 = memref.load %arg3[%c5_274, %c2_275] : memref<8x4xf32, #tpu.memory_space<smem>>
    %318 = vector.broadcast %317 : f32 to vector<16x128xf32>
    %319 = arith.mulf %164, %318 : vector<16x128xf32>
    %320 = arith.addf %316, %319 : vector<16x128xf32>
    %c5_276 = arith.constant 5 : index
    %c3_277 = arith.constant 3 : index
    %321 = memref.load %arg3[%c5_276, %c3_277] : memref<8x4xf32, #tpu.memory_space<smem>>
    %322 = vector.broadcast %321 : f32 to vector<16x128xf32>
    %323 = arith.mulf %219, %322 : vector<16x128xf32>
    %324 = arith.addf %320, %323 : vector<16x128xf32>
    %c0_278 = arith.constant 0 : index
    %c5_279 = arith.constant 5 : index
    %c0_280 = arith.constant 0 : index
    %c0_281 = arith.constant 0 : index
    %325 = vector.load %arg4[%c0_278, %c5_279, %c0_280, %c0_281] : memref<1x8x16x128xf32, #tpu.memory_space<vmem>>, vector<1x1x16x128xf32>
    %326 = vector.shape_cast %325 : vector<1x1x16x128xf32> to vector<16x128xf32>
    %327 = vector.shape_cast %324 : vector<16x128xf32> to vector<1x1x16x128xf32>
    tpu.vector_store %arg4[%c0_278, %c5_279, %c0_280, %c0_281], %327 {strides = array<i32>} : memref<1x8x16x128xf32, #tpu.memory_space<vmem>>, vector<1x1x16x128xf32>,
    %c6_282 = arith.constant 6 : index
    %c0_283 = arith.constant 0 : index
    %328 = memref.load %arg3[%c6_282, %c0_283] : memref<8x4xf32, #tpu.memory_space<smem>>
    %329 = vector.broadcast %328 : f32 to vector<16x128xf32>
    %330 = arith.mulf %54, %329 : vector<16x128xf32>
    %c6_284 = arith.constant 6 : index
    %c1_285 = arith.constant 1 : index
    %331 = memref.load %arg3[%c6_284, %c1_285] : memref<8x4xf32, #tpu.memory_space<smem>>
    %332 = vector.broadcast %331 : f32 to vector<16x128xf32>
    %333 = arith.mulf %109, %332 : vector<16x128xf32>
    %334 = arith.addf %330, %333 : vector<16x128xf32>
    %c6_286 = arith.constant 6 : index
    %c2_287 = arith.constant 2 : index
    %335 = memref.load %arg3[%c6_286, %c2_287] : memref<8x4xf32, #tpu.memory_space<smem>>
    %336 = vector.broadcast %335 : f32 to vector<16x128xf32>
    %337 = arith.mulf %164, %336 : vector<16x128xf32>
    %338 = arith.addf %334, %337 : vector<16x128xf32>
    %c6_288 = arith.constant 6 : index
    %c3_289 = arith.constant 3 : index
    %339 = memref.load %arg3[%c6_288, %c3_289] : memref<8x4xf32, #tpu.memory_space<smem>>
    %340 = vector.broadcast %339 : f32 to vector<16x128xf32>
    %341 = arith.mulf %219, %340 : vector<16x128xf32>
    %342 = arith.addf %338, %341 : vector<16x128xf32>
    %c0_290 = arith.constant 0 : index
    %c6_291 = arith.constant 6 : index
    %c0_292 = arith.constant 0 : index
    %c0_293 = arith.constant 0 : index
    %343 = vector.load %arg4[%c0_290, %c6_291, %c0_292, %c0_293] : memref<1x8x16x128xf32, #tpu.memory_space<vmem>>, vector<1x1x16x128xf32>
    %344 = vector.shape_cast %343 : vector<1x1x16x128xf32> to vector<16x128xf32>
    %345 = vector.shape_cast %342 : vector<16x128xf32> to vector<1x1x16x128xf32>
    tpu.vector_store %arg4[%c0_290, %c6_291, %c0_292, %c0_293], %345 {strides = array<i32>} : memref<1x8x16x128xf32, #tpu.memory_space<vmem>>, vector<1x1x16x128xf32>,
    %c7_294 = arith.constant 7 : index
    %c0_295 = arith.constant 0 : index
    %346 = memref.load %arg3[%c7_294, %c0_295] : memref<8x4xf32, #tpu.memory_space<smem>>
    %347 = vector.broadcast %346 : f32 to vector<16x128xf32>
    %348 = arith.mulf %54, %347 : vector<16x128xf32>
    %c7_296 = arith.constant 7 : index
    %c1_297 = arith.constant 1 : index
    %349 = memref.load %arg3[%c7_296, %c1_297] : memref<8x4xf32, #tpu.memory_space<smem>>
    %350 = vector.broadcast %349 : f32 to vector<16x128xf32>
    %351 = arith.mulf %109, %350 : vector<16x128xf32>
    %352 = arith.addf %348, %351 : vector<16x128xf32>
    %c7_298 = arith.constant 7 : index
    %c2_299 = arith.constant 2 : index
    %353 = memref.load %arg3[%c7_298, %c2_299] : memref<8x4xf32, #tpu.memory_space<smem>>
    %354 = vector.broadcast %353 : f32 to vector<16x128xf32>
    %355 = arith.mulf %164, %354 : vector<16x128xf32>
    %356 = arith.addf %352, %355 : vector<16x128xf32>
    %c7_300 = arith.constant 7 : index
    %c3_301 = arith.constant 3 : index
    %357 = memref.load %arg3[%c7_300, %c3_301] : memref<8x4xf32, #tpu.memory_space<smem>>
    %358 = vector.broadcast %357 : f32 to vector<16x128xf32>
    %359 = arith.mulf %219, %358 : vector<16x128xf32>
    %360 = arith.addf %356, %359 : vector<16x128xf32>
    %c0_302 = arith.constant 0 : index
    %c7_303 = arith.constant 7 : index
    %c0_304 = arith.constant 0 : index
    %c0_305 = arith.constant 0 : index
    %361 = vector.load %arg4[%c0_302, %c7_303, %c0_304, %c0_305] : memref<1x8x16x128xf32, #tpu.memory_space<vmem>>, vector<1x1x16x128xf32>
    %362 = vector.shape_cast %361 : vector<1x1x16x128xf32> to vector<16x128xf32>
    %363 = vector.shape_cast %360 : vector<16x128xf32> to vector<1x1x16x128xf32>
    tpu.vector_store %arg4[%c0_302, %c7_303, %c0_304, %c0_305], %363 {strides = array<i32>} : memref<1x8x16x128xf32, #tpu.memory_space<vmem>>, vector<1x1x16x128xf32>,
    return
  }
  func.func @transform_0(%arg0: i32) -> (i32, i32, i32, i32) {
    %c0_i32 = arith.constant 0 : i32
    %c0_i32_0 = arith.constant 0 : i32
    %c0_i32_1 = arith.constant 0 : i32
    %c0_i32_2 = arith.constant 0 : i32
    return %arg0, %c0_i32, %c0_i32_0, %c0_i32_1 : i32, i32, i32, i32
  }
  func.func @transform_1(%arg0: i32) -> (i32, i32) {
    %c0_i32 = arith.constant 0 : i32
    %c0_i32_0 = arith.constant 0 : i32
    %c0_i32_1 = arith.constant 0 : i32
    return %c0_i32, %c0_i32_0 : i32, i32
  }
  func.func @transform_2(%arg0: i32) -> (i32, i32) {
    %c0_i32 = arith.constant 0 : i32
    %c0_i32_0 = arith.constant 0 : i32
    %c0_i32_1 = arith.constant 0 : i32
    return %c0_i32, %c0_i32_0 : i32, i32
  }
  func.func @transform_3(%arg0: i32) -> (i32, i32, i32, i32) {
    %c0_i32 = arith.constant 0 : i32
    %c0_i32_0 = arith.constant 0 : i32
    %c0_i32_1 = arith.constant 0 : i32
    %c0_i32_2 = arith.constant 0 : i32
    return %arg0, %c0_i32, %c0_i32_0, %c0_i32_1 : i32, i32, i32, i32
  }
}

</mosaic_0001>

<bundles_post_ra>
// kernel: tpu_custom_call.1
= control target key start
LH: loop header
LB: loop body
LE: loop exit
PB: predicated region body
PF: predicated region fallthrough
CT: control target
= control target key end

     0   :  { %s1854_s0 = inlined_call_operand.vmem [shape: f32[6,4,18,128], index: 0, kind: input, shape index: {}]   ;;  %s1855_s1 = inlined_call_operand.vmem [shape: f32[4,9], index: 1, kind: input, shape index: {}]   ;;  %s1856_s2 = inlined_call_operand.vmem [shape: f32[8,4], index: 2, kind: input, shape index: {}]   ;;  %s1857_s3 = inlined_call_operand.hbm [shape: f32[2,8,16,128], index: 3, kind: output, shape index: {}]  }
   0x1   :  { %1886 = sst [smem:[#allocation30_spill]] %s1854_s0 }
   0x2   :  { %1887 = sst [smem:[#allocation31_spill]] %s1855_s1 }
   0x3   :  { %1888 = sst [smem:[#allocation32_spill]] %s1856_s2 }
   0x4   :  { %1889 = sst [smem:[#allocation33_spill]] %s1857_s3 }
   0x5   :  { %8 = vsyncpa [#allocation4], 0 }
   0x6   :  { %9 = vsyncpa [#allocation6], 0 }
   0x7   :  { %10 = vsyncpa [#allocation3], 0 }
   0x8   :  { %12 = vsyncpa [#allocation3 + $0x1], 0  ;;  %s1149_s12 = smov 0   ;;  %s1151_s13 = smov 0  }
   0x9   :  { %s1153_s14 = smov 0   ;;  %s1155_s15 = smov 0  }
   0xa LB: > { %1890 = sst [smem:[#allocation11_spill]] %s1110_s12  ;;  %s1170_s16 = sadd.s32 4294967295, %s1122_s15   ;;  %s1122_s15 = sphi %s1155_s15, %s1944_s15   ;;  %s1118_s14 = sphi %s1153_s14, %s1946_s14   ;;  %s1114_s13 = sphi %s1151_s13, %s1948_s13   ;;  %s1110_s12 = sphi %s1149_s12, %s1947_s12  }
   0xb   : > { %1891 = sst [smem:[#allocation12_spill]] %s1118_s14  ;;  %s797_s17 = sadd.s32 4294967294, %s1122_s15  }
   0xc   : > { %1892 = sst [smem:[#allocation13_spill]] %s1122_s15  ;;  %s1174_s18 = sadd.s32 1, %s1122_s15  }
   0xd   : > { %1893 = sst [smem:[#allocation14_spill]] %s1170_s16  ;;  %s93_s19 = sadd.s32 1, %s1118_s14 }
   0xe   : > { %1894 = sst [smem:[#allocation15_spill]] %s1174_s18  ;;  %s90_s20 = ssub.s32 %s1122_s15, %s1174_s18 }
   0xf   : > { %p103_p0 = scmp.ne.s32.totalorder %s1118_s14, %s1114_s13  ;;  %p91_p1 = scmp.eq.s32.totalorder %s90_s20, 0 }
  0x10   : > { %p104_p2 = scmp.eq.s32.totalorder %s1170_s16, 1  ;;  %p109_p3 = scmp.ne.s32.totalorder %s1114_s13, %s1110_s12 }
  0x11   : > { %p110_p4 = scmp.eq.s32.totalorder %s797_s17, 1  ;;  %p798_p7 = scmp.ge.s32.totalorder %s1122_s15, 1 }
  0x12   : > { %s1185_s21 = scalar_select %p91_p1, %s1118_s14, %s93_s19  }
  0x13   : > { %p1187_p5 = por %p104_p2, %p103_p0  ;;  %p1191_p6 = por %p110_p4, %p109_p3 }
  0x14   : > { %1895 = sst [smem:[#allocation16_spill]] %s1185_s21  ;;  %p117_p8 = scmp.lt.s32.totalorder %s1122_s15, 3 }
  0x15   : > { %s1896_s22 = scalar_select %p1187_p5, 1, 0 }
  0x16   : > { %s1898_s23 = scalar_select %p1191_p6, 1, 0 }
  0x17   : > { %1897 = sst [smem:[#allocation17_spill]] %s1896_s22  ;;  %p1858_p9 = scmp.eq.s32.totalorder %s1170_s16, 0 }
  0x18   : > { %1899 = sst [smem:[#allocation18_spill]] %s1898_s23  ;;  %p1198_p10 = pnand %p798_p7, %p117_p8 }
  0x19   : > { %s1901_s1 = sld [smem:[#allocation31_spill]]  ;;  %s1902_s2 = sld [smem:[#allocation32_spill]] }
  0x1a   : > { %s1900_s24 = scalar_select %p1198_p10, 1, 0 }
  0x1b   : > { %p970_p11 = pneg %p1198_p10 }
  0x1d   : > { %p1212_p12 = pnand %p1858_p9, %p970_p11 }
  0x1f   : > { %s130_s27 = sshll.u32 %s1901_s1, 4  ;;  %s141_s30 = sshll.u32 %s1902_s2, 4  ;;  %s131_s27 = int_to_ptr.vmem [resolvable:$true] %s130_s27  ;;  %s142_s30 = int_to_ptr.vmem [resolvable:$true] %s141_s30 }
  0x20   : > { %s1022_s5 = scalar_lea.vmem %s131_s27, 64  ;;  %p1024_p0 = pneg %p1212_p12 }
  0x21   : > { %p1023_p13 = scmp.ne.s32.totalorder %s131_s27, %s1022_s5  ;;  %p1030_p3 = scmp.lt.s32.totalorder %s131_s27, %s131_s27 }
  0x22   : > { %p1031_p4 = scmp.lt.s32.totalorder %s1022_s5, %s1022_s5 }
  0x23   : > { %p1025_p1 = pnand %p1024_p0, %p1023_p13 }
  0x24   : > { %p1032_p7 = por %p1031_p4, %p1030_p3 }
  0x25   : > { %p1026_p2 = pneg %p1025_p1 }
  0x27   : > { %p1033_p8 = pnand %p1032_p7, %p1026_p2 }
  0x29   : > { %1036 = shalt.err (!%p1033_p8)
}
  0x2a   : > { %s1124_s6 = smov [#allocation2]   ;;  %s1037_s7 = scalar_lea.vmem %s142_s30, 128 }
  0x2b   : > { %973 = dma.vmem_to_smem (!%p1212_p12), %s131_s27, 64, %s1124_s6, [#allocation4]  }
  0x2c   : > { %p1038_p11 = scmp.ne.s32.totalorder %s142_s30, %s1037_s7  ;;  %p1045_p5 = scmp.lt.s32.totalorder %s142_s30, %s142_s30 }
  0x2d   : > { %p1046_p10 = scmp.lt.s32.totalorder %s1037_s7, %s1037_s7 }
  0x2e   : > { %p1040_p9 = pnand %p1038_p11, %p1024_p0 }
  0x2f   : > { %p1047_p13 = por %p1046_p10, %p1045_p5 }
  0x30   : > { %p1041_p6 = pneg %p1040_p9 }
  0x32   : > { %p1048_p1 = pnand %p1047_p13, %p1041_p6 }
  0x34   : > { %1051 = shalt.err (!%p1048_p1)
}
  0x35   : > { %s1125_s8 = smov [#allocation5]   ;;  %p1904_p2 = scmp.ne.s32.totalorder %s1900_s24, 0 }
  0x36   : > { %976 = dma.vmem_to_smem (!%p1212_p12), %s142_s30, 128, %s1125_s8, [#allocation6]  }
  0x37   : > { %164 = sbr.rel (%p1904_p2) target bundleno = 183 (0xb7), region = 32 }
  0x3e   : > { %p1905_p3 = scmp.eq.s32.totalorder %s1170_s16, 0 }
  0x40   : > { %1097 = dma.done.wait (%p1905_p3), [#allocation4], 64   ;;  %p1906_p4 = pmov %p1905_p3 }
  0x41   : > { %p1907_p9 = pmov %p1905_p3 }
  0x42   : > { %1099 = vsyncadd (%p1906_p4), [#allocation4], 4294967232 }
  0x43   : > { %1101 = dma.done.wait (%p1907_p9), [#allocation6], 128   ;;  %p1908_p5 = pmov %p1905_p3 }
  0x45   : > { %1103 = vsyncadd (%p1908_p5), [#allocation6], 4294967168 }
  0x46   : > { %174 = sfence }
  0x47   : > { %s194_s9 = smul.u32 3, %s1170_s16  ;;  %s1233_s10 = sld [smem:[#allocation2]] }
  0x48   : > { %s1235_s11 = sld [smem:[#allocation2 + $0x1]]  ;;  %s1237_s17 = sld [smem:[#allocation2 + $0x2]] }
  0x49   : > { %p195_p6 = scmp.lt.s32.totalorder %s194_s9, 5  ;;  %s1239_s19 = sld [smem:[#allocation2 + $0x3]] }
  0x4a   : > { %s1241_s20 = sld [smem:[#allocation2 + $0x4]]  ;;  %s1243_s25 = sld [smem:[#allocation2 + $0x5]] }
  0x4b   : > { %s1950_s9 = smov (!%p195_p6, %s194_s9), 5  ;;  %s1246_s26 = sld [smem:[#allocation2 + $0x6]] }
  0x4c   : > { %s959_s24 = smul.u32 96, %s1950_s9  ;;  %s1248_s27 = sld [smem:[#allocation2 + $0x7]] }
  0x4d   : > { %v204_v0 = vstv %s1233_s10  ;;  %s1909_s0 = sld [smem:[#allocation30_spill]]  ;;  %s1255_s4 = sld [smem:[#allocation2 + $0x8]] }
  0x4e   : > { %v213_v3 = vstv %s1235_s11  ;;  %s1261_s5 = sld [smem:[#allocation2 + $0x80]]  ;;  %v222_v7 = vstv %s1237_s17  ;;  %s1269_s6 = sld [smem:[#allocation2 + $0x81]] }
  0x4f   : > { %v230_v10 = vstv %s1239_s19  ;;  %s1276_s7 = sld [smem:[#allocation2 + $0x82]]  ;;  %s1278_s8 = sld [smem:[#allocation2 + $0x83]] }
  0x50   : > { %v238_v12 = vstv %s1241_s20  ;;  %v246_v16 = vstv %s1243_s25  ;;  %s1284_s9 = sld [smem:[#allocation2 + $0x84]]  ;;  %s1291_s28 = sld [smem:[#allocation2 + $0x86]] }
  0x51   : > { %v254_v18 = vstv %s1246_s26  ;;  %s1298_s29 = sld [smem:[#allocation2 + $0x87]]  ;;  %s1314_s1 = sld [smem:[#allocation2 + $0x100]] }
  0x52   : > { %v262_v23 = vstv %s1248_s27  ;;  %s1316_s2 = sld [smem:[#allocation2 + $0x101]]  ;;  %s1326_s21 = sld [smem:[#allocation2 + $0x102]] }
  0x53   : > { %s1253_s30 = scalar_lea.vmem %s1909_s0, %s959_s24  ;;  %s1289_s24 = sld [smem:[#allocation2 + $0x85]]  ;;  %v270_v27 = vstv %s1255_s4 }
  0x54   : > { %v201_v1 = vld [vmem:[%s1253_s30] sm:$0xff]  ;;  %v827_v19 = vld [vmem:[%s1253_s30 + $0x18] sm:$0xff]  ;;  %v279_v28 = vstv %s1261_s5  ;;  %s1306_s0 = sld [smem:[#allocation2 + $0x88]]  ;;  %v288_v33 = vstv %s1269_s6  ;;  %s1328_s14 = sld [smem:[#allocation2 + $0x103]] }
  0x55   : > { %v807_v2 = vld [vmem:[%s1253_s30 + $0x60] sm:$0xff]  ;;  %v205_v5 = vmul.f32 %v204_v0, %v201_v1  ;;  %v830_v24 = vld [vmem:[%s1253_s30 + $0x78] sm:$0xff]  ;;  %v280_v32 = vmul.f32 %v827_v19, %v279_v28  ;;  %v297_v37 = vstv %s1276_s7  ;;  %v305_v38 = vstv %s1278_s8  ;;  %s1337_s18 = sld [smem:[#allocation2 + $0x104]]  ;;  %s1339_s23 = sld [smem:[#allocation2 + $0x105]] }
  0x56   : > { %v810_v4 = vld [vmem:[%s1253_s30 + $0xc0] sm:$0xff]  ;;  %v214_v6 = vmul.f32 %v807_v2, %v213_v3  ;;  %1911 = sst [smem:[#allocation20_spill]] %s1291_s28  ;;  %v833_v29 = vld [vmem:[%s1253_s30 + $0xd8] sm:$0xff]  ;;  %v289_v36 = vmul.f32 %v830_v24, %v288_v33  ;;  %v313_v44 = vstv %s1284_s9  ;;  %v329_v50 = vstv %s1291_s28  ;;  %s1346_s12 = sld [smem:[#allocation2 + $0x106]] }
  0x57   : > { %v227_v8 = vld [vmem:[%s1253_s30 + $0x1] sm:$0xff]  ;;  %v223_v9 = vmul.f32 %v810_v4, %v222_v7  ;;  %1912 = sst [smem:[#allocation21_spill]] %s1298_s29  ;;  %v836_v34 = vld [vmem:[%s1253_s30 + $0x19] sm:$0xff]  ;;  %v298_v43 = vmul.f32 %v833_v29, %v297_v37  ;;  %s1348_s15 = sld [smem:[#allocation2 + $0x107]]  ;;  %v337_v55 = vstv %s1298_s29  ;;  %v854_v56 = vld [vmem:[%s1253_s30 + $0x30] sm:$0xff] }
  0x58   : > { %v814_v11 = vld [vmem:[%s1253_s30 + $0x61] sm:$0xff]  ;;  %v216_v13 = vadd.f32 %v214_v6, %v205_v5  ;;  %v231_v14 = vmul.f32 %v230_v10, %v227_v8  ;;  %1914 = sst [smem:[#allocation23_spill]] %s1314_s1  ;;  %v839_v39 = vld [vmem:[%s1253_s30 + $0x79] sm:$0xff]  ;;  %v291_v47 = vadd.f32 %v289_v36, %v280_v32  ;;  %v306_v48 = vmul.f32 %v836_v34, %v305_v38  ;;  %v857_v57 = vld [vmem:[%s1253_s30 + $0x90] sm:$0xff]  ;;  %s1357_s3 = sld [smem:[#allocation2 + $0x108]] }
  0x59   : > { %v817_v15 = vld [vmem:[%s1253_s30 + $0xc1] sm:$0xff]  ;;  %1910 = sst [smem:[#allocation19_spill]] %s1289_s24  ;;  %v239_v21 = vmul.f32 %v814_v11, %v238_v12  ;;  %v842_v40 = vld [vmem:[%s1253_s30 + $0xd9] sm:$0xff]  ;;  %v321_v49 = vstv %s1289_s24  ;;  %v314_v53 = vmul.f32 %v839_v39, %v313_v44  ;;  %v860_v62 = vld [vmem:[%s1253_s30 + $0xf0] sm:$0xff]  ;;  %s1369_s16 = sld [smem:[#allocation2 + $0x181]] }
  0x5a   : > { %v251_v17 = vld [vmem:[%s1253_s30 + $0x2] sm:$0xff]  ;;  %v225_v20 = vadd.f32 %v223_v9, %v216_v13  ;;  %v247_v25 = vmul.f32 %v817_v15, %v246_v16  ;;  %1913 = sst [smem:[#allocation22_spill]] %s1306_s0  ;;  %v845_v45 = vld [vmem:[%s1253_s30 + $0x1a] sm:$0xff]  ;;  %v322_v54 = vmul.f32 %v842_v40, %v321_v49  ;;  %s1359_s22 = sld [smem:[#allocation2 + $0x180]]  ;;  %v300_v58 = vadd.f32 %v298_v43, %v291_v47  ;;  %v863_v5 = vld [vmem:[%s1253_s30 + $0x31] sm:$0xff] }
  0x5b   : > { %v821_v22 = vld [vmem:[%s1253_s30 + $0x62] sm:$0xff]  ;;  %v255_v31 = vmul.f32 %v254_v18, %v251_v17  ;;  %1915 = sst [smem:[#allocation24_spill]] %s1316_s2  ;;  %v848_v46 = vld [vmem:[%s1253_s30 + $0x7a] sm:$0xff]  ;;  %v330_v59 = vmul.f32 %v845_v45, %v329_v50  ;;  %v345_v61 = vstv %s1306_s0  ;;  %s1371_s24 = sld [smem:[#allocation2 + $0x182]]  ;;  %v354_v2 = vstv %s1314_s1 }
  0x5c   : > { %v824_v26 = vld [vmem:[%s1253_s30 + $0xc2] sm:$0xff]  ;;  %v233_v30 = vadd.f32 %v231_v14, %v225_v20  ;;  %v263_v35 = vmul.f32 %v821_v22, %v262_v23  ;;  %1916 = sst [smem:[#allocation25_spill]] %s1326_s21  ;;  %v851_v51 = vld [vmem:[%s1253_s30 + $0xda] sm:$0xff]  ;;  %v1365_v60 = vmul.f32 %v848_v46, %v337_v55  ;;  %v363_v4 = vstv %s1316_s2  ;;  %v866_v6 = vld [vmem:[%s1253_s30 + $0x91] sm:$0xff]  ;;  %s1381_s29 = sld [smem:[#allocation2 + $0x183]] }
  0x5d   : > { %1917 = sst [smem:[#allocation26_spill]] %s1328_s14  ;;  %v271_v42 = vmul.f32 %v824_v26, %v270_v27  ;;  %v1375_v1 = vmul.f32 %v851_v51, %v345_v61  ;;  %s1383_s28 = sld [smem:[#allocation2 + $0x184]]  ;;  %v308_v8 = vadd.f32 %v306_v48, %v300_v58  ;;  %v355_v9 = vmul.f32 %v854_v56, %v354_v2  ;;  %v869_v20 = vld [vmem:[%s1253_s30 + $0xf1] sm:$0xff]  ;;  %v881_v36 = vld [vmem:[%s1253_s30 + $0x48] sm:$0xff] }
  0x5e   : > { %v241_v41 = vadd.f32 %v239_v21, %v233_v30  ;;  %1918 = sst [smem:[#allocation27_spill]] %s1337_s18  ;;  %v364_v11 = vmul.f32 %v857_v57, %v363_v4  ;;  %v372_v13 = vstv %s1326_s21  ;;  %v380_v17 = vstv %s1328_s14  ;;  %v872_v21 = vld [vmem:[%s1253_s30 + $0x32] sm:$0xff]  ;;  %s1396_s0 = sld [smem:[#allocation2 + $0x185]]  ;;  %v884_v43 = vld [vmem:[%s1253_s30 + $0xa8] sm:$0xff] }
  0x5f   : > { %1919 = sst [smem:[#allocation28_spill]] %s1339_s23  ;;  %v373_v15 = vmul.f32 %v860_v62, %v372_v13  ;;  %v388_v19 = vstv %s1337_s18  ;;  %s1398_s1 = sld [smem:[#allocation2 + $0x186]]  ;;  %v316_v22 = vadd.f32 %v314_v53, %v308_v8  ;;  %v875_v29 = vld [vmem:[%s1253_s30 + $0x92] sm:$0xff]  ;;  %v396_v32 = vstv %s1339_s23  ;;  %v887_v45 = vld [vmem:[%s1253_s30 + $0x108] sm:$0xff] }
  0x60   : > { %1920 = sst [smem:[#allocation29_spill]] %s1346_s12  ;;  %v249_v52 = vadd.f32 %v247_v25, %v241_v41  ;;  %v366_v24 = vadd.f32 %v364_v11, %v355_v9  ;;  %v381_v25 = vmul.f32 %v863_v5, %v380_v17  ;;  %v389_v26 = vmul.f32 %v866_v6, %v388_v19  ;;  %v878_v30 = vld [vmem:[%s1253_s30 + $0xf2] sm:$0xff]  ;;  %s1406_s21 = sld [smem:[#allocation2 + $0x187]]  ;;  %v893_v58 = vld [vmem:[%s1253_s30 + $0xa9] sm:$0xff] }
  0x61   : > { %v404_v34 = vstv %s1346_s12  ;;  %s1414_s14 = sld [smem:[#allocation2 + $0x188]]  ;;  %v324_v39 = vadd.f32 %v322_v54, %v316_v22  ;;  %v397_v41 = vmul.f32 %v869_v20, %v396_v32  ;;  %s1424_s2 = sld [smem:[#allocation5 + $0x1]]  ;;  %v420_v47 = vstv %s1357_s3  ;;  %v896_v62 = vld [vmem:[%s1253_s30 + $0x109] sm:$0xff] }
  0x62   : > { %v257_v63 = vadd.f32 %v255_v31, %v249_v52  ;;  %s1416_s18 = sld [smem:[#allocation5]]  ;;  %v375_v40 = vadd.f32 %v373_v15, %v366_v24  ;;  %v429_v48 = vstv %s1359_s22  ;;  %v438_v51 = vstv %s1369_s16  ;;  %v890_v52 = vld [vmem:[%s1253_s30 + $0x49] sm:$0xff]  ;;  %s1432_s12 = sld [smem:[#allocation5 + $0x2]] }
  0x63   : > { %s1434_s23 = sld [smem:[#allocation5 + $0x3]]  ;;  %v332_v53 = vadd.f32 %v330_v59, %v324_v39  ;;  %v421_v56 = vmul.f32 %v878_v30, %v420_v47  ;;  %v430_v57 = vmul.f32 %v881_v36, %v429_v48  ;;  %v447_v5 = vstv %s1371_s24  ;;  %v899_v59 = vld [vmem:[%s1253_s30 + $0x4a] sm:$0xff]  ;;  %s191_s17 = sand.u32 1, %s1114_s13  }
  0x64   : > { %v265_v14 = vadd.f32 %v263_v35, %v257_v63  ;;  %v412_v35 = vstv %s1348_s15  ;;  %v383_v54 = vadd.f32 %v381_v25, %v375_v40  ;;  %v439_v63 = vmul.f32 %v884_v43, %v438_v51  ;;  %v902_v25 = vld [vmem:[%s1253_s30 + $0xaa] sm:$0xff]  ;;  %s1560_s6 = sshll.u32 %s191_s17, 7  ;;  %s1569_s8 = sld [smem:[#allocation5 + $0x80]] }
  0x65   : > { %v413_v46 = vmul.f32 %v875_v29, %v412_v35  ;;  %v455_v6 = vstv %s1381_s29  ;;  %v463_v8 = vstv %s1383_s28  ;;  %v340_v9 = vadd.f32 %v1365_v60, %v332_v53  ;;  %v905_v60 = vld [vmem:[%s1253_s30 + $0x10a] sm:$0xff]  ;;  %s1581_s10 = sld [smem:[#allocation5 + $0x81]]  ;;  %s1583_s11 = sld [smem:[#allocation5 + $0x82]] }
  0x66   : > { %v1408_v31 = vadd.f32 %v271_v42, %v265_v14  ;;  %v405_v42 = vmul.f32 %v872_v21, %v404_v34  ;;  %v391_v11 = vadd.f32 %v389_v26, %v383_v54  ;;  %v448_v14 = vmul.f32 %v887_v45, %v447_v5  ;;  %v202_v39 = vld [vmem:[%s1253_s30 + $0x8] sm:$0xff]  ;;  %s1602_s19 = sld [smem:[#allocation5 + $0x83]]  ;;  %s1616_s3 = sld [smem:[#allocation5 + $0x100]] }
  0x67   : > { %v456_v15 = vmul.f32 %v890_v52, %v455_v6  ;;  %v441_v20 = vadd.f32 %v439_v63, %v430_v57  ;;  %v464_v21 = vmul.f32 %v893_v58, %v463_v8  ;;  %v471_v22 = vstv %s1396_s0  ;;  %v808_v53 = vld [vmem:[%s1253_s30 + $0x68] sm:$0xff]  ;;  %s1618_s15 = sld [smem:[#allocation5 + $0x101]]  ;;  %s1624_s16 = scalar_lea.vmem [#allocation7], %s1560_s6 }
  0x68   : > { %v479_v24 = vstv %s1398_s1  ;;  %v1460_v26 = vadd.f32 %v1375_v1, %v340_v9  ;;  %v399_v29 = vadd.f32 %v397_v41, %v391_v11  ;;  %v472_v30 = vmul.f32 %v896_v62, %v471_v22  ;;  %v811_v58 = vld [vmem:[%s1253_s30 + $0xc8] sm:$0xff]  ;;  %s1633_s22 = sld [smem:[#allocation5 + $0x102]]  ;;  %s1643_s0 = sld [smem:[#allocation5 + $0x103]] }
  0x69   : > { %v480_v36 = vmul.f32 %v899_v59, %v479_v24  ;;  %v450_v40 = vadd.f32 %v448_v14, %v441_v20  ;;  %v1885_v43 = vstv %s1406_s21  ;;  %v1883_v45 = vstv %s1414_s14  ;;  %v228_v62 = vld [vmem:[%s1253_s30 + $0x9] sm:$0xff]  ;;  %s1658_s1 = sld [smem:[#allocation5 + $0x180]]  ;;  %s1695_s24 = sld [smem:[#allocation5 + $0x203]] }
  0x6a   : > { %v1882_v52 = vstv %s1416_s18  ;;  %v407_v1 = vadd.f32 %v405_v42, %v399_v29  ;;  %v488_v41 = vmul.f32 %v902_v25, %v1885_v43  ;;  %v1475_v54 = vmul.f32 %v905_v60, %v1883_v45  ;;  %v815_v63 = vld [vmem:[%s1253_s30 + $0x69] sm:$0xff]  ;;  %s1706_s28 = sld [smem:[#allocation5 + $0x280]]  ;;  %s1714_s29 = sld [smem:[#allocation5 + $0x281]] }
  0x6b   : > { %v502_v57 = vmul.f32 %v1882_v52, %v1408_v31  ;;  %v458_v59 = vadd.f32 %v456_v15, %v450_v40  ;;  %v1884_v42 = vstv %s1424_s2  ;;  %v511_v9 = vstv %s1432_s12  ;;  %v818_v14 = vld [vmem:[%s1253_s30 + $0xc9] sm:$0xff]  ;;  %s1693_s12 = sld [smem:[#allocation5 + $0x202]]  ;;  %s1733_s25 = sld [smem:[#allocation5 + $0x300]] }
  0x6c   : > { %v517_v11 = vstv %s1434_s23  ;;  %v415_v20 = vadd.f32 %v413_v46, %v407_v1  ;;  %v506_v25 = vmul.f32 %v1884_v42, %v1460_v26  ;;  %v206_v60 = vmul.f32 %v204_v0, %v202_v39  ;;  %v252_v52 = vld [vmem:[%s1253_s30 + $0xa] sm:$0xff]  ;;  %v828_v0 = vld [vmem:[%s1253_s30 + $0x20] sm:$0xff]  ;;  %s1716_s20 = sld [smem:[#allocation5 + $0x282]]  ;;  %s1721_s23 = sld [smem:[#allocation5 + $0x283]] }
  0x6d   : > { %v215_v29 = vmul.f32 %v808_v53, %v213_v3  ;;  %v822_v15 = vld [vmem:[%s1253_s30 + $0x6a] sm:$0xff]  ;;  %v466_v45 = vadd.f32 %v464_v21, %v458_v59  ;;  %v224_v46 = vmul.f32 %v811_v58, %v222_v7  ;;  %v232_v1 = vmul.f32 %v230_v10, %v228_v62  ;;  %v831_v39 = vld [vmem:[%s1253_s30 + $0x80] sm:$0xff]  ;;  %s1735_s26 = sld [smem:[#allocation5 + $0x301]]  ;;  %s1739_s27 = sld [smem:[#allocation5 + $0x302]] }
  0x6e   : > { %v825_v40 = vld [vmem:[%s1253_s30 + $0xca] sm:$0xff]  ;;  %v240_v42 = vmul.f32 %v815_v63, %v238_v12  ;;  %v1505_v3 = vadd.f32 %v421_v56, %v415_v20  ;;  %v508_v53 = vadd.f32 %v506_v25, %v502_v57  ;;  %v248_v21 = vmul.f32 %v818_v14, %v246_v16  ;;  %v834_v7 = vld [vmem:[%s1253_s30 + $0xe0] sm:$0xff]  ;;  %v855_v20 = vld [vmem:[%s1253_s30 + $0x38] sm:$0xff]  ;;  %s1745_s4 = sld [smem:[#allocation5 + $0x303]]  ;;  %s1753_s5 = sld [smem:[#allocation5 + $0x380]] }
  0x6f   : > { %v217_v43 = vadd.f32 %v215_v29, %v206_v60  ;;  %v837_v58 = vld [vmem:[%s1253_s30 + $0x21] sm:$0xff]  ;;  %v474_v12 = vadd.f32 %v472_v30, %v466_v45  ;;  %v256_v62 = vmul.f32 %v254_v18, %v252_v52  ;;  %v1516_v56 = vmul.f32 %v822_v15, %v262_v23  ;;  %v861_v15 = vld [vmem:[%s1253_s30 + $0xf8] sm:$0xff]  ;;  %s1759_s6 = sld [smem:[#allocation5 + $0x381]]  ;;  %s1764_s7 = sld [smem:[#allocation5 + $0x382]] }
  0x70   : > { %v840_v10 = vld [vmem:[%s1253_s30 + $0x81] sm:$0xff]  ;;  %v1520_v57 = vmul.f32 %v825_v40, %v270_v27  ;;  %v512_v16 = vmul.f32 %v511_v9, %v1505_v3  ;;  %v281_v14 = vmul.f32 %v828_v0, %v279_v28  ;;  %v290_v30 = vmul.f32 %v831_v39, %v288_v33  ;;  %v858_v33 = vld [vmem:[%s1253_s30 + $0x98] sm:$0xff]  ;;  %s1936_s9 = sld [smem:[#allocation14_spill]] }
  0x71   : > { %v843_v63 = vld [vmem:[%s1253_s30 + $0xe1] sm:$0xff]  ;;  %v226_v59 = vadd.f32 %v224_v46, %v217_v43  ;;  %v482_v27 = vadd.f32 %v480_v36, %v474_v12  ;;  %v299_v52 = vmul.f32 %v834_v7, %v297_v37  ;;  %v307_v43 = vmul.f32 %v837_v58, %v305_v38  ;;  %v864_v37 = vld [vmem:[%s1253_s30 + $0x39] sm:$0xff]  ;;  %v882_v58 = vld [vmem:[%s1253_s30 + $0x50] sm:$0xff] }
  0x72   : > { %v846_v18 = vld [vmem:[%s1253_s30 + $0x22] sm:$0xff]  ;;  %v315_v28 = vmul.f32 %v840_v10, %v313_v44  ;;  %v514_v25 = vadd.f32 %v512_v16, %v508_v53  ;;  %v292_v29 = vadd.f32 %v290_v30, %v281_v14  ;;  %v323_v36 = vmul.f32 %v843_v63, %v321_v49  ;;  %v867_v40 = vld [vmem:[%s1253_s30 + $0x99] sm:$0xff]  ;;  %v888_v16 = vld [vmem:[%s1253_s30 + $0x110] sm:$0xff] }
  0x73   : > { %v849_v23 = vld [vmem:[%s1253_s30 + $0x82] sm:$0xff]  ;;  %v234_v60 = vadd.f32 %v232_v1, %v226_v59  ;;  %v490_v38 = vadd.f32 %v488_v41, %v482_v27  ;;  %v331_v44 = vmul.f32 %v846_v18, %v329_v50  ;;  %v870_v0 = vld [vmem:[%s1253_s30 + $0xf9] sm:$0xff]  ;;  %v356_v53 = vmul.f32 %v855_v20, %v354_v2  ;;  %v894_v30 = vld [vmem:[%s1253_s30 + $0xb1] sm:$0xff] }
  0x74   : > { %v852_v45 = vld [vmem:[%s1253_s30 + $0xe2] sm:$0xff]  ;;  %v1551_v46 = vmul.f32 %v849_v23, %v337_v55  ;;  %v301_v39 = vadd.f32 %v299_v52, %v292_v29  ;;  %v365_v41 = vmul.f32 %v858_v33, %v363_v4  ;;  %v873_v50 = vld [vmem:[%s1253_s30 + $0x3a] sm:$0xff]  ;;  %v382_v2 = vmul.f32 %v864_v37, %v380_v17  ;;  %v891_v17 = vld [vmem:[%s1253_s30 + $0x51] sm:$0xff] }
  0x75   : > { %v1555_v1 = vmul.f32 %v852_v45, %v345_v61  ;;  %v242_v49 = vadd.f32 %v240_v42, %v234_v60  ;;  %v876_v55 = vld [vmem:[%s1253_s30 + $0x9a] sm:$0xff]  ;;  %v1572_v61 = vadd.f32 %v1475_v54, %v490_v38  ;;  %v374_v42 = vmul.f32 %v861_v15, %v372_v13  ;;  %v885_v13 = vld [vmem:[%s1253_s30 + $0xb0] sm:$0xff] }
  0x76   : > { %v879_v7 = vld [vmem:[%s1253_s30 + $0xfa] sm:$0xff]  ;;  %v390_v4 = vmul.f32 %v867_v40, %v388_v19  ;;  %v309_v12 = vadd.f32 %v307_v43, %v301_v39  ;;  %v367_v54 = vadd.f32 %v365_v41, %v356_v53  ;;  %v398_v63 = vmul.f32 %v870_v0, %v396_v32  ;;  %v897_v27 = vld [vmem:[%s1253_s30 + $0x111] sm:$0xff] }
  0x77   : > { %v250_v10 = vadd.f32 %v248_v21, %v242_v49  ;;  %v518_v19 = vmul.f32 %v517_v11, %v1572_v61  ;;  %v406_v59 = vmul.f32 %v873_v50, %v404_v34  ;;  %v414_v21 = vmul.f32 %v876_v55, %v412_v35  ;;  %v900_v52 = vld [vmem:[%s1253_s30 + $0x52] sm:$0xff] }
  0x78   : > { %v1599_v14 = vmul.f32 %v879_v7, %v420_v47  ;;  %v317_v18 = vadd.f32 %v315_v28, %v309_v12  ;;  %v376_v23 = vadd.f32 %v374_v42, %v367_v54  ;;  %v431_v45 = vmul.f32 %v882_v58, %v429_v48  ;;  %v903_v34 = vld [vmem:[%s1253_s30 + $0xb2] sm:$0xff] }
  0x79   : > { %v258_v32 = vadd.f32 %v256_v62, %v250_v10  ;;  %v520_v43 = vadd.f32 %v518_v19, %v514_v25  ;;  %v440_v35 = vmul.f32 %v885_v13, %v438_v51  ;;  %v449_v47 = vmul.f32 %v888_v16, %v447_v5  ;;  %v906_v62 = vld [vmem:[%s1253_s30 + $0x112] sm:$0xff]  ;;  %s1688_s30 = sld [smem:[#allocation5 + $0x201]] }
  0x7a   : > { %v457_v20 = vmul.f32 %v891_v17, %v455_v6  ;;  %v325_v28 = vadd.f32 %v323_v36, %v317_v18  ;;  %v384_v33 = vadd.f32 %v382_v2, %v376_v23  ;;  %v465_v25 = vmul.f32 %v894_v30, %v463_v8 }
  0x7b   : > { %v266_v48 = vadd.f32 %v1516_v56, %v258_v32  ;;  %522 = vst [vmem:[%s1624_s16] sm:$0xff] %v520_v43  ;;  %v442_v51 = vadd.f32 %v440_v35, %v431_v45  ;;  %v473_v5 = vmul.f32 %v897_v27, %v471_v22  ;;  %v481_v6 = vmul.f32 %v900_v52, %v479_v24 }
  0x7c   : > { %v1932_v60 = vstv %s1406_s21  ;;  %v333_v36 = vadd.f32 %v331_v44, %v325_v28  ;;  %v392_v8 = vadd.f32 %v390_v4, %v384_v33  ;;  %v1933_v15 = vstv %s1414_s14  ;;  %s1660_s14 = sld [smem:[#allocation5 + $0x181]]  ;;  %s1671_s21 = sld [smem:[#allocation5 + $0x183]] }
  0x7d   : > { %v489_v29 = vmul.f32 %v903_v34, %v1932_v60  ;;  %v1636_v56 = vadd.f32 %v1520_v57, %v266_v48  ;;  %v497_v37 = vmul.f32 %v906_v62, %v1933_v15  ;;  %v451_v40 = vadd.f32 %v449_v47, %v442_v51 }
  0x7e   : > { %v525_v38 = vstv %s1569_s8  ;;  %v529_v0 = vstv %s1581_s10  ;;  %v535_v49 = vstv %s1583_s11  ;;  %v341_v22 = vadd.f32 %v1551_v46, %v333_v36  ;;  %s1766_s8 = sld [smem:[#allocation5 + $0x383]]  ;;  %s1937_s10 = sld [smem:[#allocation17_spill]] }
  0x7f   : > { %v400_v24 = vadd.f32 %v398_v63, %v392_v8  ;;  %v1934_v39 = vstv %s1416_s18  ;;  %v526_v53 = vmul.f32 %v525_v38, %v1408_v31  ;;  %v459_v44 = vadd.f32 %v457_v20, %v451_v40  ;;  %s1669_s18 = sld [smem:[#allocation5 + $0x182]]  ;;  %s958_s11 = sshll.u32 %s1936_s9, 11 }
  0x80   : > { %v503_v57 = vmul.f32 %v1934_v39, %v1636_v56  ;;  %v530_v41 = vmul.f32 %v529_v0, %v1460_v26  ;;  %v536_v50 = vmul.f32 %v535_v49, %v1505_v3  ;;  %v541_v55 = vstv %s1602_s19  ;;  %s713_s19 = sshll.u32 %s1624_s16, 4  ;;  %s1807_s19 = int_to_ptr.vmem [resolvable:$true] %s713_s19 }
  0x81   : > { %v1654_v7 = vadd.f32 %v1555_v1, %v341_v22  ;;  %v408_v42 = vadd.f32 %v406_v59, %v400_v24  ;;  %v542_v46 = vmul.f32 %v541_v55, %v1572_v61  ;;  %v527_v2 = vmul.f32 %v525_v38, %v1636_v56 }
  0x82   : > { %v467_v4 = vadd.f32 %v465_v25, %v459_v44  ;;  %v532_v58 = vadd.f32 %v530_v41, %v526_v53  ;;  %v550_v10 = vstv %s1616_s3  ;;  %v554_v12 = vstv %s1618_s15 }
  0x83   : > { %v416_v54 = vadd.f32 %v414_v21, %v408_v42  ;;  %v1935_v63 = vstv %s1424_s2  ;;  %v531_v1 = vmul.f32 %v529_v0, %v1654_v7  ;;  %v551_v16 = vmul.f32 %v550_v10, %v1408_v31  ;;  %s1686_s2 = sld [smem:[#allocation5 + $0x200]] }
  0x84   : > { %v507_v13 = vmul.f32 %v1935_v63, %v1654_v7  ;;  %v475_v17 = vadd.f32 %v473_v5, %v467_v4  ;;  %v538_v19 = vadd.f32 %v536_v50, %v532_v58  ;;  %v555_v59 = vmul.f32 %v554_v12, %v1460_v26  ;;  %p1939_p12 = scmp.ne.s32.totalorder %s1937_s10, 0 }
  0x85   : > { %v560_v30 = vstv %s1633_s22  ;;  %v1676_v21 = vadd.f32 %v1599_v14, %v416_v54  ;;  %v533_v18 = vadd.f32 %v531_v1, %v527_v2  ;;  %v566_v34 = vstv %s1643_s0  ;;  %s1938_s22 = sld [smem:[#allocation33_spill]] }
  0x86   : > { %v509_v32 = vadd.f32 %v507_v13, %v503_v57  ;;  %v561_v23 = vmul.f32 %v560_v30, %v1505_v3  ;;  %v483_v45 = vadd.f32 %v481_v6, %v475_v17  ;;  %v544_v27 = vadd.f32 %v542_v46, %v538_v19 }
  0x87   : > { %v557_v52 = vadd.f32 %v555_v59, %v551_v16  ;;  %v513_v43 = vmul.f32 %v511_v9, %v1676_v21  ;;  %v537_v35 = vmul.f32 %v535_v49, %v1676_v21  ;;  %v567_v47 = vmul.f32 %v566_v34, %v1572_v61 }
  0x88   : > { %v552_v14 = vmul.f32 %v550_v10, %v1636_v56  ;;  %v491_v20 = vadd.f32 %v489_v29, %v483_v45  ;;  %915 = vst [vmem:[%s1624_s16 + $0x10] sm:$0xff] %v544_v27  ;;  %v556_v48 = vmul.f32 %v554_v12, %v1654_v7  ;;  %v562_v9 = vmul.f32 %v560_v30, %v1676_v21 }
  0x89   : > { %v563_v62 = vadd.f32 %v561_v23, %v557_v52  ;;  %v515_v28 = vadd.f32 %v513_v43, %v509_v32  ;;  %v539_v33 = vadd.f32 %v537_v35, %v533_v18  ;;  %v575_v25 = vstv %s1658_s1  ;;  %s1813_s1 = scalar_lea.sflag [#allocation3], %s191_s17 }
  0x8a   : > { %v579_v51 = vstv %s1660_s14  ;;  %v1699_v5 = vadd.f32 %v497_v37, %v491_v20  ;;  %v558_v60 = vadd.f32 %v556_v48, %v552_v14  ;;  %v576_v29 = vmul.f32 %v575_v25, %v1408_v31  ;;  %s1052_s14 = scalar_lea.vmem %s1807_s19, 2048 }
  0x8b   : > { %v569_v6 = vadd.f32 %v567_v47, %v563_v62  ;;  %v580_v36 = vmul.f32 %v579_v51, %v1460_v26  ;;  %v585_v8 = vstv %s1669_s18  ;;  %v591_v15 = vstv %s1671_s21  ;;  %s1805_s0 = scalar_lea.hbm %s1938_s22, %s958_s11  ;;  %p1053_p10 = scmp.ne.s32.totalorder %s1807_s19, %s1052_s14 }
  0x8c   : > { %v577_v40 = vmul.f32 %v575_v25, %v1636_v56  ;;  %v519_v38 = vmul.f32 %v517_v11, %v1699_v5  ;;  %v543_v0 = vmul.f32 %v541_v55, %v1699_v5  ;;  %v564_v37 = vadd.f32 %v562_v9, %v558_v60  ;;  %s1126_s18 = smov [#allocation7]  }
  0x8d   : > { %921 = vst [vmem:[%s1624_s16 + $0x20] sm:$0xff] %v569_v6  ;;  %v568_v49 = vmul.f32 %v566_v34, %v1699_v5  ;;  %v582_v22 = vadd.f32 %v580_v36, %v576_v29  ;;  %v586_v24 = vmul.f32 %v585_v8, %v1505_v3  ;;  %v592_v11 = vmul.f32 %v591_v15, %v1572_v61  ;;  %p1054_p0 = pnand %p1053_p10, %p1939_p12  ;;  %s1056_s21 = sshll.u32 %s1126_s18, 4  ;;  %s1057_s21 = int_to_ptr.vmem [resolvable:$false] %s1056_s21 }
  0x8e   : > { %v581_v39 = vmul.f32 %v579_v51, %v1654_v7  ;;  %v521_v57 = vadd.f32 %v519_v38, %v515_v28  ;;  %v545_v53 = vadd.f32 %v543_v0, %v539_v33  ;;  %v587_v41 = vmul.f32 %v585_v8, %v1676_v21  ;;  %p1059_p8 = scmp.lt.s32.totalorder %s1807_s19, %s1057_s21 }
  0x8f   : > { %v570_v44 = vadd.f32 %v568_v49, %v564_v37  ;;  %v588_v50 = vadd.f32 %v586_v24, %v582_v22  ;;  %v593_v42 = vmul.f32 %v591_v15, %v1699_v5  ;;  %v600_v46 = vstv %s1686_s2  ;;  %p1055_p7 = pneg %p1054_p0  ;;  %s1058_s2 = scalar_lea.vmem %s1057_s21, 4096 }
  0x90   : > { %v583_v55 = vadd.f32 %v581_v39, %v577_v40  ;;  %523 = vst [vmem:[%s1624_s16 + $0x8] sm:$0xff] %v521_v57  ;;  %916 = vst [vmem:[%s1624_s16 + $0x18] sm:$0xff] %v545_v53  ;;  %v601_v2 = vmul.f32 %v600_v46, %v1408_v31  ;;  %v604_v4 = vstv %s1688_s30  ;;  %v610_v58 = vstv %s1693_s12  ;;  %p1060_p11 = scmp.lt.s32.totalorder %s1058_s2, %s1052_s14 }
  0x91   : > { %922 = vst [vmem:[%s1624_s16 + $0x28] sm:$0xff] %v570_v44  ;;  %v616_v10 = vstv %s1695_s24  ;;  %v594_v12 = vadd.f32 %v592_v11, %v588_v50  ;;  %v605_v63 = vmul.f32 %v604_v4, %v1460_v26  ;;  %v611_v13 = vmul.f32 %v610_v58, %v1505_v3 }
  0x92   : > { %v589_v54 = vadd.f32 %v587_v41, %v583_v55  ;;  %v617_v1 = vmul.f32 %v616_v10, %v1572_v61  ;;  %v602_v16 = vmul.f32 %v600_v46, %v1636_v56  ;;  %v606_v17 = vmul.f32 %v604_v4, %v1654_v7  ;;  %p1061_p13 = por %p1060_p11, %p1059_p8 }
  0x93   : > { %v612_v19 = vmul.f32 %v610_v58, %v1676_v21  ;;  %927 = vst [vmem:[%s1624_s16 + $0x30] sm:$0xff] %v594_v12  ;;  %v607_v30 = vadd.f32 %v605_v63, %v601_v2  ;;  %v618_v32 = vmul.f32 %v616_v10, %v1699_v5  ;;  %v625_v18 = vstv %s1706_s28 }
  0x94   : > { %v595_v59 = vadd.f32 %v593_v42, %v589_v54  ;;  %v608_v23 = vadd.f32 %v606_v17, %v602_v16  ;;  %v626_v45 = vmul.f32 %v625_v18, %v1408_v31  ;;  %v629_v27 = vstv %s1714_s29  ;;  %p1062_p1 = pnand %p1061_p13, %p1055_p7 }
  0x95   : > { %v635_v52 = vstv %s1716_s20  ;;  %v613_v34 = vadd.f32 %v611_v13, %v607_v30  ;;  %v630_v43 = vmul.f32 %v629_v27, %v1460_v26  ;;  %v641_v47 = vstv %s1721_s23 }
  0x96   : > { %928 = vst [vmem:[%s1624_s16 + $0x38] sm:$0xff] %v595_v59  ;;  %v636_v35 = vmul.f32 %v635_v52, %v1505_v3  ;;  %v614_v14 = vadd.f32 %v612_v19, %v608_v23  ;;  %v642_v20 = vmul.f32 %v641_v47, %v1572_v61  ;;  %v627_v62 = vmul.f32 %v625_v18, %v1636_v56 }
  0x97   : > { %v631_v48 = vmul.f32 %v629_v27, %v1654_v7  ;;  %v619_v9 = vadd.f32 %v617_v1, %v613_v34  ;;  %v632_v28 = vadd.f32 %v630_v43, %v626_v45  ;;  %v637_v33 = vmul.f32 %v635_v52, %v1676_v21 }
  0x98   : > { %v643_v25 = vmul.f32 %v641_v47, %v1699_v5  ;;  %v620_v51 = vadd.f32 %v618_v32, %v614_v14  ;;  %v650_v60 = vstv %s1733_s25  ;;  %v654_v29 = vstv %s1735_s26 }
  0x99   : > { %v633_v6 = vadd.f32 %v631_v48, %v627_v62  ;;  %933 = vst [vmem:[%s1624_s16 + $0x40] sm:$0xff] %v619_v9  ;;  %v638_v36 = vadd.f32 %v636_v35, %v632_v28  ;;  %v651_v8 = vmul.f32 %v650_v60, %v1408_v31  ;;  %v655_v15 = vmul.f32 %v654_v29, %v1460_v26 }
  0x9a   : > { %v660_v40 = vstv %s1739_s27  ;;  %934 = vst [vmem:[%s1624_s16 + $0x48] sm:$0xff] %v620_v51  ;;  %v666_v37 = vstv %s1745_s4  ;;  %v652_v49 = vmul.f32 %v650_v60, %v1636_v56  ;;  %v656_v39 = vmul.f32 %v654_v29, %v1654_v7 }
  0x9b   : > { %v639_v38 = vadd.f32 %v637_v33, %v633_v6  ;;  %v661_v0 = vmul.f32 %v660_v40, %v1505_v3  ;;  %v644_v22 = vadd.f32 %v642_v20, %v638_v36  ;;  %v657_v24 = vadd.f32 %v655_v15, %v651_v8 }
  0x9c   : > { %v667_v11 = vmul.f32 %v666_v37, %v1572_v61  ;;  %v662_v53 = vmul.f32 %v660_v40, %v1676_v21  ;;  %v668_v44 = vmul.f32 %v666_v37, %v1699_v5  ;;  %v675_v41 = vstv %s1753_s5 }
  0x9d   : > { %v645_v57 = vadd.f32 %v643_v25, %v639_v38  ;;  %939 = vst [vmem:[%s1624_s16 + $0x50] sm:$0xff] %v644_v22  ;;  %v663_v50 = vadd.f32 %v661_v0, %v657_v24  ;;  %v658_v55 = vadd.f32 %v656_v39, %v652_v49  ;;  %v676_v42 = vmul.f32 %v675_v41, %v1408_v31 }
  0x9e   : > { %v679_v46 = vstv %s1759_s6  ;;  %v685_v4 = vstv %s1764_s7  ;;  %v691_v58 = vstv %s1766_s8  ;;  %v677_v10 = vmul.f32 %v675_v41, %v1636_v56 }
  0x9f   : > { %940 = vst [vmem:[%s1624_s16 + $0x58] sm:$0xff] %v645_v57  ;;  %v680_v2 = vmul.f32 %v679_v46, %v1460_v26  ;;  %v669_v12 = vadd.f32 %v667_v11, %v663_v50  ;;  %v664_v54 = vadd.f32 %v662_v53, %v658_v55  ;;  %v686_v63 = vmul.f32 %v685_v4, %v1505_v3 }
  0xa0   : > { %v692_v1 = vmul.f32 %v691_v58, %v1572_v61  ;;  %v681_v31 = vmul.f32 %v679_v46, %v1654_v7  ;;  %v687_v26 = vmul.f32 %v685_v4, %v1676_v21  ;;  %v693_v56 = vmul.f32 %v691_v58, %v1699_v5 }
  0xa1   : > { %v682_v13 = vadd.f32 %v680_v2, %v676_v42  ;;  %945 = vst [vmem:[%s1624_s16 + $0x60] sm:$0xff] %v669_v12  ;;  %v670_v16 = vadd.f32 %v668_v44, %v664_v54 }
  0xa2   : > { %v683_v19 = vadd.f32 %v681_v31, %v677_v10 }
  0xa3   : > { %v688_v17 = vadd.f32 %v686_v63, %v682_v13  ;;  %946 = vst [vmem:[%s1624_s16 + $0x68] sm:$0xff] %v670_v16 }
  0xa4   : > { %v689_v59 = vadd.f32 %v687_v26, %v683_v19 }
  0xa5   : > { %v694_v3 = vadd.f32 %v692_v1, %v688_v17 }
  0xa6   : > { %v695_v61 = vadd.f32 %v693_v56, %v689_v59 }
  0xa7   : > { %951 = vst [vmem:[%s1624_s16 + $0x70] sm:$0xff] %v694_v3 }
  0xa8   : > { %952 = vst [vmem:[%s1624_s16 + $0x78] sm:$0xff] %v695_v61 }
  0xa9   : > { %1065 = shalt.err (!%p1062_p1)
}
  0xaa   : > { %s1066_s17 = scalar_lea.hbm %s1805_s0, 2048  ;;  %s1070_s12 = scalar_lea.hbm %s1938_s22, 4096 }
  0xab   : > { %p1067_p2 = scmp.ne.s32.totalorder %s1805_s0, %s1066_s17  ;;  %p1071_p9 = scmp.lt.u32.totalorder %s1805_s0, %s1938_s22 }
  0xac   : > { %p1072_p5 = scmp.lt.u32.totalorder %s1070_s12, %s1066_s17  ;;  %p1074_p10 = scmp.lt.u32.totalorder %s1066_s17, %s1805_s0 }
  0xad   : > { %p1068_p3 = pnand %p1067_p2, %p1939_p12 }
  0xae   : > { %p1073_p6 = por %p1072_p5, %p1071_p9 }
  0xaf   : > { %p1069_p4 = pneg %p1068_p3 }
  0xb0   : > { %p1075_p0 = por %p1074_p10, %p1073_p6 }
  0xb2   : > { %p1076_p7 = pnand %p1075_p0, %p1069_p4 }
  0xb4   : > { %1079 = shalt.err (!%p1076_p7)
}
  0xb5   : > { %s1127_s29 = smov 128   ;;  %s1128_s20 = smov 8  }
  0xb6   : > { %968 = dma.vmem_to_hbm [thread:$0]  (%p1939_p12), %s1807_s19, 2048, %s1805_s0, %s1813_s1, %s1127_s29, %s1127_s29, %s1128_s20  }
  0xb7 PF: > { %s1940_s23 = sld [smem:[#allocation13_spill]]  ;;  %s1941_s25 = sld [smem:[#allocation11_spill]] }
  0xb8   : > { %s1942_s26 = sld [smem:[#allocation18_spill]] }
  0xbd   : > { %p985_p8 = scmp.ge.s32.totalorder %s1940_s23, 2  ;;  %s728_s27 = sand.u32 1, %s1941_s25  }
  0xbe   : > { %p1943_p11 = scmp.ne.s32.totalorder %s1942_s26, 0  ;;  %s729_s4 = scalar_lea.sflag [#allocation3], %s728_s27 }
  0xc0   : > { %p978_p13 = pnand %p985_p8, %p1943_p11 }
  0xc2   : > { %1105 = dma.done.wait (!%p978_p13), %s729_s4, 2048  }
  0xc3   : > { %1107 = vsyncadd (!%p978_p13), %s729_s4, 4294965248  ;;  %s1944_s15 = sld [smem:[#allocation15_spill]]  ;;  %s1945_s5 = sld [smem:[#allocation12_spill]] }
  0xc4   : > { %s1946_s14 = sld [smem:[#allocation16_spill]]  ;;  %s1947_s12 = smov %s1114_s13 }
  0xc9   : > { %p15_p1 = scmp.ge.s32.totalorder %s1944_s15, 4   ;;  %s1948_s13 = smov %s1945_s5 }
  0xcb   :  { %17 = sbr.rel (!%p15_p1) target bundleno = 10 (0xa), region = 94 }
  0xd2   :  { %734 = vsyncpa [#allocation3], 1 }
  0xd3   :  { %736 = vsyncpa [#allocation3 + $0x1], 1 }
  0xd4   :  { %737 = vsyncpa [#allocation4], 1 }
  0xd5   :  { %739 = vsyncpa [#allocation4 + $0x1], 1 }
  0xd6   :  { %740 = vsyncpa [#allocation6], 1 }

</bundles_post_ra>
